<compile_context>
chip_gen: v5e
topology: v5e:2x2
jax: 0.10.0
libtpu: 0.0.40
codegen_flags: <defaults>
</compile_context>

<pallas_src>
import math
from functools import partial

import jax
import jax.numpy as jnp
from jax.experimental import pallas as pl
from jax.experimental.pallas import tpu as pltpu


def _encoder_layer_kernel(x_ref,
                          wq_ref, bq_ref, wk_ref, bk_ref, wv_ref, bv_ref,
                          wo_ref, bo_ref,
                          g1_ref, bn1_ref,
                          w1_ref, b1_ref, w2_ref, b2_ref,
                          g2_ref, bn2_ref,
                          out_ref, attn_ref,
                          *, n_heads: int, eps: float):
    # x_ref: (1, L, D); weights: full 2-D blocks; out_ref: (1, L, D); attn_ref: (1, H, L, L)
    x = x_ref[0]                                   # (L, D)
    D = x.shape[-1]
    E = D // n_heads
    scale = 1.0 / math.sqrt(E)

    # ---- Q/K/V projections (MXU, f32 accumulation) ----
    q = jnp.dot(x, wq_ref[...], preferred_element_type=jnp.float32) + bq_ref[...]
    k = jnp.dot(x, wk_ref[...], preferred_element_type=jnp.float32) + bk_ref[...]
    v = jnp.dot(x, wv_ref[...], preferred_element_type=jnp.float32) + bv_ref[...]

    # ---- per-head scaled dot-product attention (static unroll over heads) ----
    head_outs = []
    for h in range(n_heads):
        qh = q[:, h * E:(h + 1) * E]               # (L, E)
        kh = k[:, h * E:(h + 1) * E]               # (L, E)
        vh = v[:, h * E:(h + 1) * E]               # (L, E)
        # q @ k^T without an explicit transpose
        s = jax.lax.dot_general(qh, kh, (((1,), (1,)), ((), ())),
                                preferred_element_type=jnp.float32) * scale  # (L, L)
        m = jnp.max(s, axis=-1, keepdims=True)
        p = jnp.exp(s - m)
        a = p / jnp.sum(p, axis=-1, keepdims=True)                            # (L, L)
        attn_ref[0, h, :, :] = a
        head_outs.append(jnp.dot(a, vh, preferred_element_type=jnp.float32))  # (L, E)
    attn_out = jnp.concatenate(head_outs, axis=-1)                            # (L, D)

    new_x = jnp.dot(attn_out, wo_ref[...],
                    preferred_element_type=jnp.float32) + bo_ref[...]

    # ---- residual + LayerNorm1 (dropout == identity in eval mode) ----
    x1 = x + new_x
    mu1 = jnp.mean(x1, axis=-1, keepdims=True)
    var1 = jnp.mean(jnp.square(x1 - mu1), axis=-1, keepdims=True)
    xn = (x1 - mu1) * jax.lax.rsqrt(var1 + eps) * g1_ref[...] + bn1_ref[...]

    # ---- position-wise FFN: conv1(k=1) -> ReLU -> conv2(k=1) ----
    h1 = jnp.dot(xn, w1_ref[...], preferred_element_type=jnp.float32) + b1_ref[...]
    h1 = jnp.maximum(h1, 0.0)
    y = jnp.dot(h1, w2_ref[...], preferred_element_type=jnp.float32) + b2_ref[...]

    # ---- residual + LayerNorm2 ----
    x2 = xn + y
    mu2 = jnp.mean(x2, axis=-1, keepdims=True)
    var2 = jnp.mean(jnp.square(x2 - mu2), axis=-1, keepdims=True)
    out_ref[0] = (x2 - mu2) * jax.lax.rsqrt(var2 + eps) * g2_ref[...] + bn2_ref[...]


def encoder_layer(x, params, *, n_heads: int = 4, eps: float = 1e-5):
    """Pallas forward of Informer EncoderLayer. Returns (out, attn_weights)."""
    B, L, D = x.shape
    assert D % n_heads == 0, "d_model must be divisible by n_heads"
    d_ff = params["w1"].shape[1]
    H = n_heads

    def rep(nd):
        return lambda b: (0,) * nd     # constant index_map: weight resident every step

    in_specs = [
        pl.BlockSpec((1, L, D), lambda b: (b, 0, 0)),   # x
        pl.BlockSpec((D, D), rep(2)),                   # wq
        pl.BlockSpec((1, D), rep(2)),                   # bq
        pl.BlockSpec((D, D), rep(2)),                   # wk
        pl.BlockSpec((1, D), rep(2)),                   # bk
        pl.BlockSpec((D, D), rep(2)),                   # wv
        pl.BlockSpec((1, D), rep(2)),                   # bv
        pl.BlockSpec((D, D), rep(2)),                   # wo
        pl.BlockSpec((1, D), rep(2)),                   # bo
        pl.BlockSpec((1, D), rep(2)),                   # norm1 gamma
        pl.BlockSpec((1, D), rep(2)),                   # norm1 beta
        pl.BlockSpec((D, d_ff), rep(2)),                # conv1 weight (as D x d_ff)
        pl.BlockSpec((1, d_ff), rep(2)),                # conv1 bias
        pl.BlockSpec((d_ff, D), rep(2)),                # conv2 weight (as d_ff x D)
        pl.BlockSpec((1, D), rep(2)),                   # conv2 bias
        pl.BlockSpec((1, D), rep(2)),                   # norm2 gamma
        pl.BlockSpec((1, D), rep(2)),                   # norm2 beta
    ]
    out_specs = [
        pl.BlockSpec((1, L, D), lambda b: (b, 0, 0)),          # layer output
        pl.BlockSpec((1, H, L, L), lambda b: (b, 0, 0, 0)),    # attention weights
    ]

    kernel = partial(_encoder_layer_kernel, n_heads=n_heads, eps=eps)

    out, attn = pl.pallas_call(
        kernel,
        out_shape=(
            jax.ShapeDtypeStruct((B, L, D), jnp.float32),
            jax.ShapeDtypeStruct((B, H, L, L), jnp.float32),
        ),
        grid_spec=pltpu.PrefetchScalarGridSpec(
            num_scalar_prefetch=0,
            grid=(B,),
            in_specs=in_specs,
            out_specs=out_specs,
        ),
        compiler_params=pltpu.CompilerParams(
            dimension_semantics=("parallel",)),
    )(x,
      params["wq"], params["bq"], params["wk"], params["bk"],
      params["wv"], params["bv"], params["wo"], params["bo"],
      params["g1"], params["bn1"],
      params["w1"], params["b1"], params["w2"], params["b2"],
      params["g2"], params["bn2"])
    return out, attn


def encoder_layer_ref(x, p, *, n_heads: int = 4, eps: float = 1e-5):
    """Pure-JAX reference mirroring the PyTorch EncoderLayer forward (eval mode)."""
    B, L, D = x.shape
    E = D // n_heads
    scale = 1.0 / math.sqrt(E)

    q = (x @ p["wq"] + p["bq"]).reshape(B, L, n_heads, E)
    k = (x @ p["wk"] + p["bk"]).reshape(B, L, n_heads, E)
    v = (x @ p["wv"] + p["bv"]).reshape(B, L, n_heads, E)

    s = jnp.einsum("blhe,bshe->bhls", q, k) * scale
    m = jnp.max(s, axis=-1, keepdims=True)
    pexp = jnp.exp(s - m)
    a = pexp / jnp.sum(pexp, axis=-1, keepdims=True)                 # (B, H, L, L)
    o = jnp.einsum("bhls,bshe->blhe", a, v).reshape(B, L, D)
    new_x = o @ p["wo"] + p["bo"]

    x1 = x + new_x
    mu1 = jnp.mean(x1, axis=-1, keepdims=True)
    var1 = jnp.mean((x1 - mu1) ** 2, axis=-1, keepdims=True)
    xn = (x1 - mu1) / jnp.sqrt(var1 + eps) * p["g1"] + p["bn1"]

    h1 = jnp.maximum(xn @ p["w1"] + p["b1"], 0.0)
    y = h1 @ p["w2"] + p["b2"]

    x2 = xn + y
    mu2 = jnp.mean(x2, axis=-1, keepdims=True)
    var2 = jnp.mean((x2 - mu2) ** 2, axis=-1, keepdims=True)
    out = (x2 - mu2) / jnp.sqrt(var2 + eps) * p["g2"] + p["bn2"]
    return out, a


def init_params(key, d_model, d_ff):
    ks = jax.random.split(key, 16)
    s_d = 1.0 / math.sqrt(d_model)
    s_f = 1.0 / math.sqrt(d_ff)
    f32 = jnp.float32
    return {
        "wq": jax.random.normal(ks[0], (d_model, d_model), f32) * s_d,
        "bq": jax.random.normal(ks[1], (1, d_model), f32) * 0.02,
        "wk": jax.random.normal(ks[2], (d_model, d_model), f32) * s_d,
        "bk": jax.random.normal(ks[3], (1, d_model), f32) * 0.02,
        "wv": jax.random.normal(ks[4], (d_model, d_model), f32) * s_d,
        "bv": jax.random.normal(ks[5], (1, d_model), f32) * 0.02,
        "wo": jax.random.normal(ks[6], (d_model, d_model), f32) * s_d,
        "bo": jax.random.normal(ks[7], (1, d_model), f32) * 0.02,
        "g1": 1.0 + 0.1 * jax.random.normal(ks[8], (1, d_model), f32),
        "bn1": 0.1 * jax.random.normal(ks[9], (1, d_model), f32),
        "w1": jax.random.normal(ks[10], (d_model, d_ff), f32) * s_d,   # conv1, k=1
        "b1": jax.random.normal(ks[11], (1, d_ff), f32) * 0.02,
        "w2": jax.random.normal(ks[12], (d_ff, d_model), f32) * s_f,   # conv2, k=1
        "b2": jax.random.normal(ks[13], (1, d_model), f32) * 0.02,
        "g2": 1.0 + 0.1 * jax.random.normal(ks[14], (1, d_model), f32),
        "bn2": 0.1 * jax.random.normal(ks[15], (1, d_model), f32),
    }


if __name__ == "__main__":
    B, L, d_model, n_heads = 2, 16, 32, 4
    d_ff = 4 * d_model  # 128 (lane-dense FFN intermediate)

    key = jax.random.PRNGKey(0)
    kx, kp = jax.random.split(key)
    x = jax.random.normal(kx, (B, L, d_model), jnp.float32)
    params = init_params(kp, d_model, d_ff)

    out, attn = encoder_layer(x, params, n_heads=n_heads)
    out, attn = jax.block_until_ready((out, attn))

    with jax.default_matmul_precision("highest"):
        ref_out, ref_attn = encoder_layer_ref(x, params, n_heads=n_heads)
        ref_out, ref_attn = jax.block_until_ready((ref_out, ref_attn))

    assert out.shape == (B, L, d_model) and out.dtype == jnp.float32
    assert attn.shape == (B, n_heads, L, L)
    assert jnp.allclose(out, ref_out, atol=2e-3, rtol=2e-3), "layer output mismatch"
    assert jnp.allclose(attn, ref_attn, atol=2e-3, rtol=2e-3), "attention weights mismatch"

    print("KERNEL_OK")
</pallas_src>

<mosaic_0001>
module attributes {stable_mosaic.version = 11 : i64} {
  func.func @_encoder_layer_kernel(%arg0: i32, %arg1: memref<1x16x32xf32, #tpu.memory_space<vmem>>, %arg2: memref<32x32xf32, #tpu.memory_space<vmem>>, %arg3: memref<1x32xf32, #tpu.memory_space<vmem>>, %arg4: memref<32x32xf32, #tpu.memory_space<vmem>>, %arg5: memref<1x32xf32, #tpu.memory_space<vmem>>, %arg6: memref<32x32xf32, #tpu.memory_space<vmem>>, %arg7: memref<1x32xf32, #tpu.memory_space<vmem>>, %arg8: memref<32x32xf32, #tpu.memory_space<vmem>>, %arg9: memref<1x32xf32, #tpu.memory_space<vmem>>, %arg10: memref<1x32xf32, #tpu.memory_space<vmem>>, %arg11: memref<1x32xf32, #tpu.memory_space<vmem>>, %arg12: memref<32x128xf32, #tpu.memory_space<vmem>>, %arg13: memref<1x128xf32, #tpu.memory_space<vmem>>, %arg14: memref<128x32xf32, #tpu.memory_space<vmem>>, %arg15: memref<1x32xf32, #tpu.memory_space<vmem>>, %arg16: memref<1x32xf32, #tpu.memory_space<vmem>>, %arg17: memref<1x32xf32, #tpu.memory_space<vmem>>, %arg18: memref<1x16x32xf32, #tpu.memory_space<vmem>>, %arg19: memref<1x4x16x16xf32, #tpu.memory_space<vmem>>) attributes {dimension_semantics = [#tpu.dimension_semantics<parallel>], iteration_bounds = array<i64: 2>, scalar_prefetch = 0 : i64, scratch_operands = 0 : i64, tpu.core_type = #tpu.core_type<tc>, window_params = [{transform_indices = @transform_0, window_bounds = array<i64: 1, 16, 32>}, {pipeline_mode = #tpu.pipeline_mode<synchronous>, transform_indices = @transform_1, window_bounds = array<i64: 32, 32>}, {pipeline_mode = #tpu.pipeline_mode<synchronous>, transform_indices = @transform_2, window_bounds = array<i64: 1, 32>}, {pipeline_mode = #tpu.pipeline_mode<synchronous>, transform_indices = @transform_3, window_bounds = array<i64: 32, 32>}, {pipeline_mode = #tpu.pipeline_mode<synchronous>, transform_indices = @transform_4, window_bounds = array<i64: 1, 32>}, {pipeline_mode = #tpu.pipeline_mode<synchronous>, transform_indices = @transform_5, window_bounds = array<i64: 32, 32>}, {pipeline_mode = #tpu.pipeline_mode<synchronous>, transform_indices = @transform_6, window_bounds = array<i64: 1, 32>}, {pipeline_mode = #tpu.pipeline_mode<synchronous>, transform_indices = @transform_7, window_bounds = array<i64: 32, 32>}, {pipeline_mode = #tpu.pipeline_mode<synchronous>, transform_indices = @transform_8, window_bounds = array<i64: 1, 32>}, {pipeline_mode = #tpu.pipeline_mode<synchronous>, transform_indices = @transform_9, window_bounds = array<i64: 1, 32>}, {pipeline_mode = #tpu.pipeline_mode<synchronous>, transform_indices = @transform_10, window_bounds = array<i64: 1, 32>}, {pipeline_mode = #tpu.pipeline_mode<synchronous>, transform_indices = @transform_11, window_bounds = array<i64: 32, 128>}, {pipeline_mode = #tpu.pipeline_mode<synchronous>, transform_indices = @transform_12, window_bounds = array<i64: 1, 128>}, {pipeline_mode = #tpu.pipeline_mode<synchronous>, transform_indices = @transform_13, window_bounds = array<i64: 128, 32>}, {pipeline_mode = #tpu.pipeline_mode<synchronous>, transform_indices = @transform_14, window_bounds = array<i64: 1, 32>}, {pipeline_mode = #tpu.pipeline_mode<synchronous>, transform_indices = @transform_15, window_bounds = array<i64: 1, 32>}, {pipeline_mode = #tpu.pipeline_mode<synchronous>, transform_indices = @transform_16, window_bounds = array<i64: 1, 32>}, {transform_indices = @transform_17, window_bounds = array<i64: 1, 16, 32>}, {transform_indices = @transform_18, window_bounds = array<i64: 1, 4, 16, 16>}]} {
    %c0 = arith.constant 0 : index
    %c0_0 = arith.constant 0 : index
    %c0_1 = arith.constant 0 : index
    %0 = vector.load %arg1[%c0, %c0_0, %c0_1] : memref<1x16x32xf32, #tpu.memory_space<vmem>>, vector<1x16x32xf32>
    %1 = vector.shape_cast %0 : vector<1x16x32xf32> to vector<16x32xf32>
    %c0_2 = arith.constant 0 : index
    %c0_3 = arith.constant 0 : index
    %2 = vector.load %arg2[%c0_2, %c0_3] : memref<32x32xf32, #tpu.memory_space<vmem>>, vector<32x32xf32>
    %cst = arith.constant dense<0.000000e+00> : vector<16x32xf32>
    %3 = tpu.matmul %1, %2, %cst {dimension_numbers = #tpu.dot_dimension_numbers<[1], [0], [0], [1], [0, 0, 1, 1], [], []>} : vector<16x32xf32>, vector<32x32xf32>, vector<16x32xf32> -> vector<16x32xf32>
    %c0_4 = arith.constant 0 : index
    %c0_5 = arith.constant 0 : index
    %4 = vector.load %arg3[%c0_4, %c0_5] : memref<1x32xf32, #tpu.memory_space<vmem>>, vector<1x32xf32>
    %5 = vector.broadcast %4 : vector<1x32xf32> to vector<16x32xf32>
    %6 = arith.addf %3, %5 : vector<16x32xf32>
    %c0_6 = arith.constant 0 : index
    %c0_7 = arith.constant 0 : index
    %7 = vector.load %arg4[%c0_6, %c0_7] : memref<32x32xf32, #tpu.memory_space<vmem>>, vector<32x32xf32>
    %cst_8 = arith.constant dense<0.000000e+00> : vector<16x32xf32>
    %8 = tpu.matmul %1, %7, %cst_8 {dimension_numbers = #tpu.dot_dimension_numbers<[1], [0], [0], [1], [0, 0, 1, 1], [], []>} : vector<16x32xf32>, vector<32x32xf32>, vector<16x32xf32> -> vector<16x32xf32>
    %c0_9 = arith.constant 0 : index
    %c0_10 = arith.constant 0 : index
    %9 = vector.load %arg5[%c0_9, %c0_10] : memref<1x32xf32, #tpu.memory_space<vmem>>, vector<1x32xf32>
    %10 = vector.broadcast %9 : vector<1x32xf32> to vector<16x32xf32>
    %11 = arith.addf %8, %10 : vector<16x32xf32>
    %c0_11 = arith.constant 0 : index
    %c0_12 = arith.constant 0 : index
    %12 = vector.load %arg6[%c0_11, %c0_12] : memref<32x32xf32, #tpu.memory_space<vmem>>, vector<32x32xf32>
    %cst_13 = arith.constant dense<0.000000e+00> : vector<16x32xf32>
    %13 = tpu.matmul %1, %12, %cst_13 {dimension_numbers = #tpu.dot_dimension_numbers<[1], [0], [0], [1], [0, 0, 1, 1], [], []>} : vector<16x32xf32>, vector<32x32xf32>, vector<16x32xf32> -> vector<16x32xf32>
    %c0_14 = arith.constant 0 : index
    %c0_15 = arith.constant 0 : index
    %14 = vector.load %arg7[%c0_14, %c0_15] : memref<1x32xf32, #tpu.memory_space<vmem>>, vector<1x32xf32>
    %15 = vector.broadcast %14 : vector<1x32xf32> to vector<16x32xf32>
    %16 = arith.addf %13, %15 : vector<16x32xf32>
    %17 = vector.extract_strided_slice %6 {offsets = [0, 0], sizes = [16, 8], strides = [1, 1]} : vector<16x32xf32> to vector<16x8xf32>
    %18 = vector.extract_strided_slice %11 {offsets = [0, 0], sizes = [16, 8], strides = [1, 1]} : vector<16x32xf32> to vector<16x8xf32>
    %19 = vector.extract_strided_slice %16 {offsets = [0, 0], sizes = [16, 8], strides = [1, 1]} : vector<16x32xf32> to vector<16x8xf32>
    %cst_16 = arith.constant dense<0.000000e+00> : vector<16x16xf32>
    %20 = tpu.matmul %17, %18, %cst_16 {dimension_numbers = #tpu.dot_dimension_numbers<[1], [1], [0], [0], [0, 0, 1, 0], [], []>} : vector<16x8xf32>, vector<16x8xf32>, vector<16x16xf32> -> vector<16x16xf32>
    %cst_17 = arith.constant 0.353553385 : f32
    %21 = vector.broadcast %cst_17 : f32 to vector<16x16xf32>
    %22 = arith.mulf %20, %21 : vector<16x16xf32>
    %cst_18 = arith.constant dense<0xFF800000> : vector<16xf32>
    %23 = vector.multi_reduction <maximumf>, %22, %cst_18 [1] : vector<16x16xf32> to vector<16xf32>
    %24 = vector.shape_cast %23 : vector<16xf32> to vector<16x1xf32>
    %25 = vector.broadcast %24 : vector<16x1xf32> to vector<16x16xf32>
    %26 = arith.subf %22, %25 : vector<16x16xf32>
    %27 = math.exp %26 : vector<16x16xf32>
    %cst_19 = arith.constant dense<0.000000e+00> : vector<16xf32>
    %28 = vector.multi_reduction <add>, %27, %cst_19 [1] : vector<16x16xf32> to vector<16xf32>
    %29 = vector.shape_cast %28 : vector<16xf32> to vector<16x1xf32>
    %30 = vector.broadcast %29 : vector<16x1xf32> to vector<16x16xf32>
    %31 = arith.divf %27, %30 : vector<16x16xf32>
    %c0_20 = arith.constant 0 : index
    %c0_21 = arith.constant 0 : index
    %c0_22 = arith.constant 0 : index
    %c0_23 = arith.constant 0 : index
    %32 = vector.load %arg19[%c0_20, %c0_21, %c0_22, %c0_23] : memref<1x4x16x16xf32, #tpu.memory_space<vmem>>, vector<1x1x16x16xf32>
    %33 = vector.shape_cast %32 : vector<1x1x16x16xf32> to vector<16x16xf32>
    %34 = vector.shape_cast %31 : vector<16x16xf32> to vector<1x1x16x16xf32>
    tpu.vector_store %arg19[%c0_20, %c0_21, %c0_22, %c0_23], %34 {strides = array<i32>} : memref<1x4x16x16xf32, #tpu.memory_space<vmem>>, vector<1x1x16x16xf32>,
    %cst_24 = arith.constant dense<0.000000e+00> : vector<16x8xf32>
    %35 = tpu.matmul %31, %19, %cst_24 {dimension_numbers = #tpu.dot_dimension_numbers<[1], [0], [0], [1], [0, 0, 1, 1], [], []>} : vector<16x16xf32>, vector<16x8xf32>, vector<16x8xf32> -> vector<16x8xf32>
    %36 = vector.extract_strided_slice %6 {offsets = [0, 8], sizes = [16, 8], strides = [1, 1]} : vector<16x32xf32> to vector<16x8xf32>
    %37 = vector.extract_strided_slice %11 {offsets = [0, 8], sizes = [16, 8], strides = [1, 1]} : vector<16x32xf32> to vector<16x8xf32>
    %38 = vector.extract_strided_slice %16 {offsets = [0, 8], sizes = [16, 8], strides = [1, 1]} : vector<16x32xf32> to vector<16x8xf32>
    %cst_25 = arith.constant dense<0.000000e+00> : vector<16x16xf32>
    %39 = tpu.matmul %36, %37, %cst_25 {dimension_numbers = #tpu.dot_dimension_numbers<[1], [1], [0], [0], [0, 0, 1, 0], [], []>} : vector<16x8xf32>, vector<16x8xf32>, vector<16x16xf32> -> vector<16x16xf32>
    %cst_26 = arith.constant 0.353553385 : f32
    %40 = vector.broadcast %cst_26 : f32 to vector<16x16xf32>
    %41 = arith.mulf %39, %40 : vector<16x16xf32>
    %cst_27 = arith.constant dense<0xFF800000> : vector<16xf32>
    %42 = vector.multi_reduction <maximumf>, %41, %cst_27 [1] : vector<16x16xf32> to vector<16xf32>
    %43 = vector.shape_cast %42 : vector<16xf32> to vector<16x1xf32>
    %44 = vector.broadcast %43 : vector<16x1xf32> to vector<16x16xf32>
    %45 = arith.subf %41, %44 : vector<16x16xf32>
    %46 = math.exp %45 : vector<16x16xf32>
    %cst_28 = arith.constant dense<0.000000e+00> : vector<16xf32>
    %47 = vector.multi_reduction <add>, %46, %cst_28 [1] : vector<16x16xf32> to vector<16xf32>
    %48 = vector.shape_cast %47 : vector<16xf32> to vector<16x1xf32>
    %49 = vector.broadcast %48 : vector<16x1xf32> to vector<16x16xf32>
    %50 = arith.divf %46, %49 : vector<16x16xf32>
    %c0_29 = arith.constant 0 : index
    %c1 = arith.constant 1 : index
    %c0_30 = arith.constant 0 : index
    %c0_31 = arith.constant 0 : index
    %51 = vector.load %arg19[%c0_29, %c1, %c0_30, %c0_31] : memref<1x4x16x16xf32, #tpu.memory_space<vmem>>, vector<1x1x16x16xf32>
    %52 = vector.shape_cast %51 : vector<1x1x16x16xf32> to vector<16x16xf32>
    %53 = vector.shape_cast %50 : vector<16x16xf32> to vector<1x1x16x16xf32>
    tpu.vector_store %arg19[%c0_29, %c1, %c0_30, %c0_31], %53 {strides = array<i32>} : memref<1x4x16x16xf32, #tpu.memory_space<vmem>>, vector<1x1x16x16xf32>,
    %cst_32 = arith.constant dense<0.000000e+00> : vector<16x8xf32>
    %54 = tpu.matmul %50, %38, %cst_32 {dimension_numbers = #tpu.dot_dimension_numbers<[1], [0], [0], [1], [0, 0, 1, 1], [], []>} : vector<16x16xf32>, vector<16x8xf32>, vector<16x8xf32> -> vector<16x8xf32>
    %55 = vector.extract_strided_slice %6 {offsets = [0, 16], sizes = [16, 8], strides = [1, 1]} : vector<16x32xf32> to vector<16x8xf32>
    %56 = vector.extract_strided_slice %11 {offsets = [0, 16], sizes = [16, 8], strides = [1, 1]} : vector<16x32xf32> to vector<16x8xf32>
    %57 = vector.extract_strided_slice %16 {offsets = [0, 16], sizes = [16, 8], strides = [1, 1]} : vector<16x32xf32> to vector<16x8xf32>
    %cst_33 = arith.constant dense<0.000000e+00> : vector<16x16xf32>
    %58 = tpu.matmul %55, %56, %cst_33 {dimension_numbers = #tpu.dot_dimension_numbers<[1], [1], [0], [0], [0, 0, 1, 0], [], []>} : vector<16x8xf32>, vector<16x8xf32>, vector<16x16xf32> -> vector<16x16xf32>
    %cst_34 = arith.constant 0.353553385 : f32
    %59 = vector.broadcast %cst_34 : f32 to vector<16x16xf32>
    %60 = arith.mulf %58, %59 : vector<16x16xf32>
    %cst_35 = arith.constant dense<0xFF800000> : vector<16xf32>
    %61 = vector.multi_reduction <maximumf>, %60, %cst_35 [1] : vector<16x16xf32> to vector<16xf32>
    %62 = vector.shape_cast %61 : vector<16xf32> to vector<16x1xf32>
    %63 = vector.broadcast %62 : vector<16x1xf32> to vector<16x16xf32>
    %64 = arith.subf %60, %63 : vector<16x16xf32>
    %65 = math.exp %64 : vector<16x16xf32>
    %cst_36 = arith.constant dense<0.000000e+00> : vector<16xf32>
    %66 = vector.multi_reduction <add>, %65, %cst_36 [1] : vector<16x16xf32> to vector<16xf32>
    %67 = vector.shape_cast %66 : vector<16xf32> to vector<16x1xf32>
    %68 = vector.broadcast %67 : vector<16x1xf32> to vector<16x16xf32>
    %69 = arith.divf %65, %68 : vector<16x16xf32>
    %c0_37 = arith.constant 0 : index
    %c2 = arith.constant 2 : index
    %c0_38 = arith.constant 0 : index
    %c0_39 = arith.constant 0 : index
    %70 = vector.load %arg19[%c0_37, %c2, %c0_38, %c0_39] : memref<1x4x16x16xf32, #tpu.memory_space<vmem>>, vector<1x1x16x16xf32>
    %71 = vector.shape_cast %70 : vector<1x1x16x16xf32> to vector<16x16xf32>
    %72 = vector.shape_cast %69 : vector<16x16xf32> to vector<1x1x16x16xf32>
    tpu.vector_store %arg19[%c0_37, %c2, %c0_38, %c0_39], %72 {strides = array<i32>} : memref<1x4x16x16xf32, #tpu.memory_space<vmem>>, vector<1x1x16x16xf32>,
    %cst_40 = arith.constant dense<0.000000e+00> : vector<16x8xf32>
    %73 = tpu.matmul %69, %57, %cst_40 {dimension_numbers = #tpu.dot_dimension_numbers<[1], [0], [0], [1], [0, 0, 1, 1], [], []>} : vector<16x16xf32>, vector<16x8xf32>, vector<16x8xf32> -> vector<16x8xf32>
    %74 = vector.extract_strided_slice %6 {offsets = [0, 24], sizes = [16, 8], strides = [1, 1]} : vector<16x32xf32> to vector<16x8xf32>
    %75 = vector.extract_strided_slice %11 {offsets = [0, 24], sizes = [16, 8], strides = [1, 1]} : vector<16x32xf32> to vector<16x8xf32>
    %76 = vector.extract_strided_slice %16 {offsets = [0, 24], sizes = [16, 8], strides = [1, 1]} : vector<16x32xf32> to vector<16x8xf32>
    %cst_41 = arith.constant dense<0.000000e+00> : vector<16x16xf32>
    %77 = tpu.matmul %74, %75, %cst_41 {dimension_numbers = #tpu.dot_dimension_numbers<[1], [1], [0], [0], [0, 0, 1, 0], [], []>} : vector<16x8xf32>, vector<16x8xf32>, vector<16x16xf32> -> vector<16x16xf32>
    %cst_42 = arith.constant 0.353553385 : f32
    %78 = vector.broadcast %cst_42 : f32 to vector<16x16xf32>
    %79 = arith.mulf %77, %78 : vector<16x16xf32>
    %cst_43 = arith.constant dense<0xFF800000> : vector<16xf32>
    %80 = vector.multi_reduction <maximumf>, %79, %cst_43 [1] : vector<16x16xf32> to vector<16xf32>
    %81 = vector.shape_cast %80 : vector<16xf32> to vector<16x1xf32>
    %82 = vector.broadcast %81 : vector<16x1xf32> to vector<16x16xf32>
    %83 = arith.subf %79, %82 : vector<16x16xf32>
    %84 = math.exp %83 : vector<16x16xf32>
    %cst_44 = arith.constant dense<0.000000e+00> : vector<16xf32>
    %85 = vector.multi_reduction <add>, %84, %cst_44 [1] : vector<16x16xf32> to vector<16xf32>
    %86 = vector.shape_cast %85 : vector<16xf32> to vector<16x1xf32>
    %87 = vector.broadcast %86 : vector<16x1xf32> to vector<16x16xf32>
    %88 = arith.divf %84, %87 : vector<16x16xf32>
    %c0_45 = arith.constant 0 : index
    %c3 = arith.constant 3 : index
    %c0_46 = arith.constant 0 : index
    %c0_47 = arith.constant 0 : index
    %89 = vector.load %arg19[%c0_45, %c3, %c0_46, %c0_47] : memref<1x4x16x16xf32, #tpu.memory_space<vmem>>, vector<1x1x16x16xf32>
    %90 = vector.shape_cast %89 : vector<1x1x16x16xf32> to vector<16x16xf32>
    %91 = vector.shape_cast %88 : vector<16x16xf32> to vector<1x1x16x16xf32>
    tpu.vector_store %arg19[%c0_45, %c3, %c0_46, %c0_47], %91 {strides = array<i32>} : memref<1x4x16x16xf32, #tpu.memory_space<vmem>>, vector<1x1x16x16xf32>,
    %cst_48 = arith.constant dense<0.000000e+00> : vector<16x8xf32>
    %92 = tpu.matmul %88, %76, %cst_48 {dimension_numbers = #tpu.dot_dimension_numbers<[1], [0], [0], [1], [0, 0, 1, 1], [], []>} : vector<16x16xf32>, vector<16x8xf32>, vector<16x8xf32> -> vector<16x8xf32>
    %93 = tpu.concatenate %35, %54, %73, %92 in 1 : vector<16x8xf32>, vector<16x8xf32>, vector<16x8xf32>, vector<16x8xf32> -> vector<16x32xf32>
    %c0_49 = arith.constant 0 : index
    %c0_50 = arith.constant 0 : index
    %94 = vector.load %arg8[%c0_49, %c0_50] : memref<32x32xf32, #tpu.memory_space<vmem>>, vector<32x32xf32>
    %cst_51 = arith.constant dense<0.000000e+00> : vector<16x32xf32>
    %95 = tpu.matmul %93, %94, %cst_51 {dimension_numbers = #tpu.dot_dimension_numbers<[1], [0], [0], [1], [0, 0, 1, 1], [], []>} : vector<16x32xf32>, vector<32x32xf32>, vector<16x32xf32> -> vector<16x32xf32>
    %c0_52 = arith.constant 0 : index
    %c0_53 = arith.constant 0 : index
    %96 = vector.load %arg9[%c0_52, %c0_53] : memref<1x32xf32, #tpu.memory_space<vmem>>, vector<1x32xf32>
    %97 = vector.broadcast %96 : vector<1x32xf32> to vector<16x32xf32>
    %98 = arith.addf %95, %97 : vector<16x32xf32>
    %99 = arith.addf %1, %98 : vector<16x32xf32>
    %cst_54 = arith.constant dense<0.000000e+00> : vector<16xf32>
    %100 = vector.multi_reduction <add>, %99, %cst_54 [1] : vector<16x32xf32> to vector<16xf32>
    %101 = vector.shape_cast %100 : vector<16xf32> to vector<16x1xf32>
    %cst_55 = arith.constant 3.200000e+01 : f32
    %102 = vector.broadcast %cst_55 : f32 to vector<16x1xf32>
    %103 = arith.divf %101, %102 : vector<16x1xf32>
    %104 = vector.broadcast %103 : vector<16x1xf32> to vector<16x32xf32>
    %105 = arith.subf %99, %104 : vector<16x32xf32>
    %106 = arith.mulf %105, %105 : vector<16x32xf32>
    %cst_56 = arith.constant dense<0.000000e+00> : vector<16xf32>
    %107 = vector.multi_reduction <add>, %106, %cst_56 [1] : vector<16x32xf32> to vector<16xf32>
    %108 = vector.shape_cast %107 : vector<16xf32> to vector<16x1xf32>
    %cst_57 = arith.constant 3.200000e+01 : f32
    %109 = vector.broadcast %cst_57 : f32 to vector<16x1xf32>
    %110 = arith.divf %108, %109 : vector<16x1xf32>
    %111 = vector.broadcast %103 : vector<16x1xf32> to vector<16x32xf32>
    %112 = arith.subf %99, %111 : vector<16x32xf32>
    %cst_58 = arith.constant 9.99999974E-6 : f32
    %113 = vector.broadcast %cst_58 : f32 to vector<16x1xf32>
    %114 = arith.addf %110, %113 : vector<16x1xf32>
    %115 = math.rsqrt %114 : vector<16x1xf32>
    %116 = vector.broadcast %115 : vector<16x1xf32> to vector<16x32xf32>
    %117 = arith.mulf %112, %116 : vector<16x32xf32>
    %c0_59 = arith.constant 0 : index
    %c0_60 = arith.constant 0 : index
    %118 = vector.load %arg10[%c0_59, %c0_60] : memref<1x32xf32, #tpu.memory_space<vmem>>, vector<1x32xf32>
    %119 = vector.broadcast %118 : vector<1x32xf32> to vector<16x32xf32>
    %120 = arith.mulf %117, %119 : vector<16x32xf32>
    %c0_61 = arith.constant 0 : index
    %c0_62 = arith.constant 0 : index
    %121 = vector.load %arg11[%c0_61, %c0_62] : memref<1x32xf32, #tpu.memory_space<vmem>>, vector<1x32xf32>
    %122 = vector.broadcast %121 : vector<1x32xf32> to vector<16x32xf32>
    %123 = arith.addf %120, %122 : vector<16x32xf32>
    %c0_63 = arith.constant 0 : index
    %c0_64 = arith.constant 0 : index
    %124 = vector.load %arg12[%c0_63, %c0_64] : memref<32x128xf32, #tpu.memory_space<vmem>>, vector<32x128xf32>
    %cst_65 = arith.constant dense<0.000000e+00> : vector<16x128xf32>
    %125 = tpu.matmul %123, %124, %cst_65 {dimension_numbers = #tpu.dot_dimension_numbers<[1], [0], [0], [1], [0, 0, 1, 1], [], []>} : vector<16x32xf32>, vector<32x128xf32>, vector<16x128xf32> -> vector<16x128xf32>
    %c0_66 = arith.constant 0 : index
    %c0_67 = arith.constant 0 : index
    %126 = vector.load %arg13[%c0_66, %c0_67] : memref<1x128xf32, #tpu.memory_space<vmem>>, vector<1x128xf32>
    %127 = vector.broadcast %126 : vector<1x128xf32> to vector<16x128xf32>
    %128 = arith.addf %125, %127 : vector<16x128xf32>
    %cst_68 = arith.constant 0.000000e+00 : f32
    %129 = vector.broadcast %cst_68 : f32 to vector<16x128xf32>
    %130 = arith.maximumf %128, %129 : vector<16x128xf32>
    %c0_69 = arith.constant 0 : index
    %c0_70 = arith.constant 0 : index
    %131 = vector.load %arg14[%c0_69, %c0_70] : memref<128x32xf32, #tpu.memory_space<vmem>>, vector<128x32xf32>
    %cst_71 = arith.constant dense<0.000000e+00> : vector<16x32xf32>
    %132 = tpu.matmul %130, %131, %cst_71 {dimension_numbers = #tpu.dot_dimension_numbers<[1], [0], [0], [1], [0, 0, 1, 1], [], []>} : vector<16x128xf32>, vector<128x32xf32>, vector<16x32xf32> -> vector<16x32xf32>
    %c0_72 = arith.constant 0 : index
    %c0_73 = arith.constant 0 : index
    %133 = vector.load %arg15[%c0_72, %c0_73] : memref<1x32xf32, #tpu.memory_space<vmem>>, vector<1x32xf32>
    %134 = vector.broadcast %133 : vector<1x32xf32> to vector<16x32xf32>
    %135 = arith.addf %132, %134 : vector<16x32xf32>
    %136 = arith.addf %123, %135 : vector<16x32xf32>
    %cst_74 = arith.constant dense<0.000000e+00> : vector<16xf32>
    %137 = vector.multi_reduction <add>, %136, %cst_74 [1] : vector<16x32xf32> to vector<16xf32>
    %138 = vector.shape_cast %137 : vector<16xf32> to vector<16x1xf32>
    %cst_75 = arith.constant 3.200000e+01 : f32
    %139 = vector.broadcast %cst_75 : f32 to vector<16x1xf32>
    %140 = arith.divf %138, %139 : vector<16x1xf32>
    %141 = vector.broadcast %140 : vector<16x1xf32> to vector<16x32xf32>
    %142 = arith.subf %136, %141 : vector<16x32xf32>
    %143 = arith.mulf %142, %142 : vector<16x32xf32>
    %cst_76 = arith.constant dense<0.000000e+00> : vector<16xf32>
    %144 = vector.multi_reduction <add>, %143, %cst_76 [1] : vector<16x32xf32> to vector<16xf32>
    %145 = vector.shape_cast %144 : vector<16xf32> to vector<16x1xf32>
    %cst_77 = arith.constant 3.200000e+01 : f32
    %146 = vector.broadcast %cst_77 : f32 to vector<16x1xf32>
    %147 = arith.divf %145, %146 : vector<16x1xf32>
    %148 = vector.broadcast %140 : vector<16x1xf32> to vector<16x32xf32>
    %149 = arith.subf %136, %148 : vector<16x32xf32>
    %cst_78 = arith.constant 9.99999974E-6 : f32
    %150 = vector.broadcast %cst_78 : f32 to vector<16x1xf32>
    %151 = arith.addf %147, %150 : vector<16x1xf32>
    %152 = math.rsqrt %151 : vector<16x1xf32>
    %153 = vector.broadcast %152 : vector<16x1xf32> to vector<16x32xf32>
    %154 = arith.mulf %149, %153 : vector<16x32xf32>
    %c0_79 = arith.constant 0 : index
    %c0_80 = arith.constant 0 : index
    %155 = vector.load %arg16[%c0_79, %c0_80] : memref<1x32xf32, #tpu.memory_space<vmem>>, vector<1x32xf32>
    %156 = vector.broadcast %155 : vector<1x32xf32> to vector<16x32xf32>
    %157 = arith.mulf %154, %156 : vector<16x32xf32>
    %c0_81 = arith.constant 0 : index
    %c0_82 = arith.constant 0 : index
    %158 = vector.load %arg17[%c0_81, %c0_82] : memref<1x32xf32, #tpu.memory_space<vmem>>, vector<1x32xf32>
    %159 = vector.broadcast %158 : vector<1x32xf32> to vector<16x32xf32>
    %160 = arith.addf %157, %159 : vector<16x32xf32>
    %c0_83 = arith.constant 0 : index
    %c0_84 = arith.constant 0 : index
    %c0_85 = arith.constant 0 : index
    %161 = vector.load %arg18[%c0_83, %c0_84, %c0_85] : memref<1x16x32xf32, #tpu.memory_space<vmem>>, vector<1x16x32xf32>
    %162 = vector.shape_cast %161 : vector<1x16x32xf32> to vector<16x32xf32>
    %163 = vector.shape_cast %160 : vector<16x32xf32> to vector<1x16x32xf32>
    tpu.vector_store %arg18[%c0_83, %c0_84, %c0_85], %163 {strides = array<i32>} : memref<1x16x32xf32, #tpu.memory_space<vmem>>, vector<1x16x32xf32>,
    return
  }
  func.func @transform_0(%arg0: i32) -> (i32, i32, i32) {
    %c0_i32 = arith.constant 0 : i32
    %c0_i32_0 = arith.constant 0 : i32
    %c0_i32_1 = arith.constant 0 : i32
    return %arg0, %c0_i32, %c0_i32_0 : i32, i32, i32
  }
  func.func @transform_1(%arg0: i32) -> (i32, i32) {
    %c0_i32 = arith.constant 0 : i32
    %c0_i32_0 = arith.constant 0 : i32
    %c0_i32_1 = arith.constant 0 : i32
    return %c0_i32, %c0_i32_0 : i32, i32
  }
  func.func @transform_2(%arg0: i32) -> (i32, i32) {
    %c0_i32 = arith.constant 0 : i32
    %c0_i32_0 = arith.constant 0 : i32
    %c0_i32_1 = arith.constant 0 : i32
    return %c0_i32, %c0_i32_0 : i32, i32
  }
  func.func @transform_3(%arg0: i32) -> (i32, i32) {
    %c0_i32 = arith.constant 0 : i32
    %c0_i32_0 = arith.constant 0 : i32
    %c0_i32_1 = arith.constant 0 : i32
    return %c0_i32, %c0_i32_0 : i32, i32
  }
  func.func @transform_4(%arg0: i32) -> (i32, i32) {
    %c0_i32 = arith.constant 0 : i32
    %c0_i32_0 = arith.constant 0 : i32
    %c0_i32_1 = arith.constant 0 : i32
    return %c0_i32, %c0_i32_0 : i32, i32
  }
  func.func @transform_5(%arg0: i32) -> (i32, i32) {
    %c0_i32 = arith.constant 0 : i32
    %c0_i32_0 = arith.constant 0 : i32
    %c0_i32_1 = arith.constant 0 : i32
    return %c0_i32, %c0_i32_0 : i32, i32
  }
  func.func @transform_6(%arg0: i32) -> (i32, i32) {
    %c0_i32 = arith.constant 0 : i32
    %c0_i32_0 = arith.constant 0 : i32
    %c0_i32_1 = arith.constant 0 : i32
    return %c0_i32, %c0_i32_0 : i32, i32
  }
  func.func @transform_7(%arg0: i32) -> (i32, i32) {
    %c0_i32 = arith.constant 0 : i32
    %c0_i32_0 = arith.constant 0 : i32
    %c0_i32_1 = arith.constant 0 : i32
    return %c0_i32, %c0_i32_0 : i32, i32
  }
  func.func @transform_8(%arg0: i32) -> (i32, i32) {
    %c0_i32 = arith.constant 0 : i32
    %c0_i32_0 = arith.constant 0 : i32
    %c0_i32_1 = arith.constant 0 : i32
    return %c0_i32, %c0_i32_0 : i32, i32
  }
  func.func @transform_9(%arg0: i32) -> (i32, i32) {
    %c0_i32 = arith.constant 0 : i32
    %c0_i32_0 = arith.constant 0 : i32
    %c0_i32_1 = arith.constant 0 : i32
    return %c0_i32, %c0_i32_0 : i32, i32
  }
  func.func @transform_10(%arg0: i32) -> (i32, i32) {
    %c0_i32 = arith.constant 0 : i32
    %c0_i32_0 = arith.constant 0 : i32
    %c0_i32_1 = arith.constant 0 : i32
    return %c0_i32, %c0_i32_0 : i32, i32
  }
  func.func @transform_11(%arg0: i32) -> (i32, i32) {
    %c0_i32 = arith.constant 0 : i32
    %c0_i32_0 = arith.constant 0 : i32
    %c0_i32_1 = arith.constant 0 : i32
    return %c0_i32, %c0_i32_0 : i32, i32
  }
  func.func @transform_12(%arg0: i32) -> (i32, i32) {
    %c0_i32 = arith.constant 0 : i32
    %c0_i32_0 = arith.constant 0 : i32
    %c0_i32_1 = arith.constant 0 : i32
    return %c0_i32, %c0_i32_0 : i32, i32
  }
  func.func @transform_13(%arg0: i32) -> (i32, i32) {
    %c0_i32 = arith.constant 0 : i32
    %c0_i32_0 = arith.constant 0 : i32
    %c0_i32_1 = arith.constant 0 : i32
    return %c0_i32, %c0_i32_0 : i32, i32
  }
  func.func @transform_14(%arg0: i32) -> (i32, i32) {
    %c0_i32 = arith.constant 0 : i32
    %c0_i32_0 = arith.constant 0 : i32
    %c0_i32_1 = arith.constant 0 : i32
    return %c0_i32, %c0_i32_0 : i32, i32
  }
  func.func @transform_15(%arg0: i32) -> (i32, i32) {
    %c0_i32 = arith.constant 0 : i32
    %c0_i32_0 = arith.constant 0 : i32
    %c0_i32_1 = arith.constant 0 : i32
    return %c0_i32, %c0_i32_0 : i32, i32
  }
  func.func @transform_16(%arg0: i32) -> (i32, i32) {
    %c0_i32 = arith.constant 0 : i32
    %c0_i32_0 = arith.constant 0 : i32
    %c0_i32_1 = arith.constant 0 : i32
    return %c0_i32, %c0_i32_0 : i32, i32
  }
  func.func @transform_17(%arg0: i32) -> (i32, i32, i32) {
    %c0_i32 = arith.constant 0 : i32
    %c0_i32_0 = arith.constant 0 : i32
    %c0_i32_1 = arith.constant 0 : i32
    return %arg0, %c0_i32, %c0_i32_0 : i32, i32, i32
  }
  func.func @transform_18(%arg0: i32) -> (i32, i32, i32, i32) {
    %c0_i32 = arith.constant 0 : i32
    %c0_i32_0 = arith.constant 0 : i32
    %c0_i32_1 = arith.constant 0 : i32
    %c0_i32_2 = arith.constant 0 : i32
    return %arg0, %c0_i32, %c0_i32_0, %c0_i32_1 : i32, i32, i32, i32
  }
}

</mosaic_0001>

<bundles_post_ra>
// kernel: tpu_custom_call.1
= control target key start
LH: loop header
LB: loop body
LE: loop exit
PB: predicated region body
PF: predicated region fallthrough
CT: control target
= control target key end

     0   :  { %s2510_s0 = inlined_call_operand.vmem [shape: f32[2,16,32], index: 0, kind: input, shape index: {}]   ;;  %s2511_s1 = inlined_call_operand.vmem [shape: f32[32,32], index: 1, kind: input, shape index: {}]   ;;  %s2512_s2 = inlined_call_operand.vmem [shape: f32[1,32], index: 2, kind: input, shape index: {}]   ;;  %s2513_s3 = inlined_call_operand.vmem [shape: f32[32,32], index: 3, kind: input, shape index: {}]   ;;  %s2514_s4 = inlined_call_operand.vmem [shape: f32[1,32], index: 4, kind: input, shape index: {}]   ;;  %s2515_s5 = inlined_call_operand.vmem [shape: f32[32,32], index: 5, kind: input, shape index: {}]   ;;  %s2516_s6 = inlined_call_operand.vmem [shape: f32[1,32], index: 6, kind: input, shape index: {}]   ;;  %s2517_s7 = inlined_call_operand.vmem [shape: f32[32,32], index: 7, kind: input, shape index: {}]   ;;  %s2518_s8 = inlined_call_operand.vmem [shape: f32[1,32], index: 8, kind: input, shape index: {}]   ;;  %s2519_s9 = inlined_call_operand.vmem [shape: f32[1,32], index: 9, kind: input, shape index: {}]   ;;  %s2520_s10 = inlined_call_operand.vmem [shape: f32[1,32], index: 10, kind: input, shape index: {}]   ;;  %s2521_s11 = inlined_call_operand.hbm [shape: f32[32,128], index: 11, kind: input, shape index: {}]   ;;  %s2522_s12 = inlined_call_operand.vmem [shape: f32[1,128], index: 12, kind: input, shape index: {}]   ;;  %s2523_s13 = inlined_call_operand.vmem [shape: f32[128,32], index: 13, kind: input, shape index: {}]   ;;  %s2524_s14 = inlined_call_operand.vmem [shape: f32[1,32], index: 14, kind: input, shape index: {}]   ;;  %s2525_s15 = inlined_call_operand.vmem [shape: f32[1,32], index: 15, kind: input, shape index: {}]   ;;  %s2526_s16 = inlined_call_operand.vmem [shape: f32[1,32], index: 16, kind: input, shape index: {}]   ;;  %s2527_s17 = inlined_call_operand.hbm [shape: f32[2,16,32], index: 17, kind: output, shape index: {0}]   ;;  %s2528_s18 = inlined_call_operand.hbm [shape: f32[2,4,16,16], index: 18, kind: output, shape index: {1}]  }
   0x1   :  { %2540 = sst [smem:[#allocation17_spill]] %s2510_s0 }
   0x2   :  { %2541 = sst [smem:[#allocation18_spill]] %s2511_s1 }
   0x3   :  { %2542 = sst [smem:[#allocation19_spill]] %s2512_s2 }
   0x4   :  { %2543 = sst [smem:[#allocation20_spill]] %s2521_s11 }
   0x5   :  { %2544 = sst [smem:[#allocation21_spill]] %s2526_s16 }
   0x6   :  { %2545 = sst [smem:[#allocation22_spill]] %s2527_s17 }
   0x7   :  { %24 = vsyncpa [#allocation3], 0 }
   0x8   :  { %25 = vsyncpa [#allocation4], 0 }
   0x9   :  { %27 = vsyncpa [#allocation4 + $0x1], 0 }
   0xa   :  { %28 = vsyncpa [#allocation7], 0 }
   0xb   :  { %30 = vsyncpa [#allocation7 + $0x1], 0  ;;  %s2058_s27 = smov 0   ;;  %s2060_s28 = smov 0  }
   0xc   :  { %s2062_s29 = smov 0   ;;  %s2064_s30 = smov 0  }
   0xd LB: > { %2546 = sst [smem:[#allocation11_spill]] %s1938_s27  ;;  %s2079_s0 = sadd.s32 4294967295, %s1950_s30   ;;  %s1950_s30 = sphi %s2064_s30, %s2567_s30   ;;  %s1946_s29 = sphi %s2062_s29, %s2569_s29   ;;  %s1942_s28 = sphi %s2060_s28, %s2571_s28   ;;  %s1938_s27 = sphi %s2058_s27, %s2570_s27  }
   0xe   : > { %2547 = sst [smem:[#allocation12_spill]] %s1946_s29  ;;  %s1625_s19 = sadd.s32 4294967294, %s1950_s30  }
   0xf   : > { %2548 = sst [smem:[#allocation13_spill]] %s1950_s30  ;;  %s2083_s1 = sadd.s32 1, %s1950_s30  }
  0x10   : > { %2549 = sst [smem:[#allocation14_spill]] %s2083_s1  ;;  %s405_s20 = sadd.s32 1, %s1946_s29 }
  0x11   : > { %s402_s21 = ssub.s32 %s1950_s30, %s2083_s1  ;;  %p415_p0 = scmp.ne.s32.totalorder %s1946_s29, %s1942_s28 }
  0x12   : > { %p403_p1 = scmp.eq.s32.totalorder %s402_s21, 0  ;;  %p416_p2 = scmp.eq.s32.totalorder %s2079_s0, 1 }
  0x13   : > { %p421_p3 = scmp.ne.s32.totalorder %s1942_s28, %s1938_s27  ;;  %p422_p4 = scmp.eq.s32.totalorder %s1625_s19, 1 }
  0x14   : > { %s2094_s22 = scalar_select %p403_p1, %s1946_s29, %s405_s20  }
  0x15   : > { %p2096_p5 = por %p416_p2, %p415_p0  ;;  %p2100_p6 = por %p422_p4, %p421_p3 }
  0x16   : > { %2550 = sst [smem:[#allocation15_spill]] %s2094_s22  ;;  %p1626_p7 = scmp.ge.s32.totalorder %s1950_s30, 1 }
  0x17   : > { %s2552_s23 = scalar_select %p2100_p6, 1, 0 }
  0x18   : > { %p455_p8 = scmp.lt.s32.totalorder %s1950_s30, 3  ;;  %p1709_p9 = scmp.eq.s32.totalorder %s2079_s0, 0 }
  0x19   : > { %2553 = sst [smem:[#allocation16_spill]] %s2552_s23  ;;  %s1952_s19 = smov [#allocation2]  }
  0x1a   : > { %p456_p10 = pnand %p1626_p7, %p455_p8  ;;  %s2554_s11 = sld [smem:[#allocation20_spill]] }
  0x1b   : > { %s498_s20 = sshll.u32 %s1952_s19, 4  ;;  %s1953_s21 = smov 128   ;;  %s499_s20 = int_to_ptr.vmem [resolvable:$true] %s498_s20 }
  0x1c   : > { %p1698_p11 = pneg %p456_p10  ;;  %s1954_s22 = smov 8  }
  0x1d   : > { %537 = sbr.rel (%p456_p10) target bundleno = 1950 (0x79e), region = 88 }
  0x1e   : > { %p1699_p12 = pnand %p1709_p9, %p1698_p11 }
  0x20   : > { %s496_s26 = sshll.u32 %s2554_s11, 4  ;;  %s497_s26 = int_to_ptr.hbm [resolvable:$true] %s496_s26 }
  0x21   : > { %1701 = dma.hbm_to_vmem [thread:$0]  (!%p1699_p12), %s497_s26, 512, %s499_s20, [#allocation3], %s1953_s21, %s1953_s21, %s1954_s22  }
  0x22   : > { %1925 = dma.done.wait (%p1709_p9), [#allocation3], 512  }
  0x23   : > { %1927 = vsyncadd (%p1709_p9), [#allocation3], 4294966784  ;;  %p597_p13 = scmp.lt.s32.totalorder %s2079_s0, 1  ;;  %s2555_s29 = sld [smem:[#allocation18_spill]]  ;;  %v645_v1 = vld [vmem:[%s2513_s3 + $0x18] sm:$0xff]  ;;  %v644_v3 = vld [vmem:[%s2513_s3 + $0x10] sm:$0xff] }
  0x24   : > { %s2557_s30 = sld [smem:[#allocation17_spill]]  ;;  %662 = vmatpush.msra.mxu2 %v645_v1  ;;  %v643_v5 = vld [vmem:[%s2513_s3 + $0x8] sm:$0xff]  ;;  %v642_v7 = vld [vmem:[%s2513_s3] sm:$0xff]  ;;  %vm612_vm0 = vcmask 261120   ;;  %vm704_vm1 = vcmask 64512   ;;  %s1956_s11 = smov 112  }
  0x25   : > { %s598_s24 = scalar_select %p597_p13, %s2079_s0, 1  ;;  %v1771_v16 = vld [vmem:[%s2514_s4] ss:$0 sm:$0xff]  ;;  %vm742_vm2 = vcmask 130048   ;;  %v676_v35 = vld [vmem:[%s2515_s5 + $0x18] sm:$0xff]  ;;  %v675_v36 = vld [vmem:[%s2515_s5 + $0x10] sm:$0xff] }
  0x26   : > { %663 = vmatpush.msra.mxu2 %v644_v3  ;;  %s2558_s20 = sld [smem:[#allocation19_spill]]  ;;  %v674_v37 = vld [vmem:[%s2515_s5 + $0x8] sm:$0xff]  ;;  %v673_v38 = vld [vmem:[%s2515_s5] sm:$0xff]  ;;  %s1960_s23 = smov 24  }
  0x27   : > { %s1683_s25 = sshll.u32 %s598_s24, 4  ;;  %s2250_s24 = sand.u32 1, %s1942_s28  }
  0x28   : > { %664 = vmatpush.msra.mxu2 %v643_v5  ;;  %s1632_s27 = sshll.u32 %s2250_s24, 6  ;;  %s1486_s22 = scalar_lea.sflag [#allocation7], %s2250_s24 }
  0x29   : > { %s2556_s1 = smov %s2555_s29  ;;  %v607_v0 = vld [vmem:[%s2555_s29 + $0x18] sm:$0xff]  ;;  %s1957_s29 = smov 104  }
  0x2a   : > { %v606_v2 = vld [vmem:[%s2556_s1 + $0x10] sm:$0xff]  ;;  %s601_s17 = scalar_lea.vmem %s2557_s30, %s1683_s25  ;;  %631 = vmatpush.msra.mxu0 %v607_v0  ;;  %1686 = vmatpush.msra.mxu3 %v607_v0  ;;  %v605_v4 = vld [vmem:[%s2556_s1 + $0x8] sm:$0xff]  ;;  %v604_v6 = vld [vmem:[%s2556_s1] sm:$0xff] }
  0x2b   : > { %v2145_v8 = vld [vmem:[%s601_s17] sm:$0xff]  ;;  %665 = vmatpush.msra.mxu2 %v642_v7  ;;  %v2147_v9 = vld [vmem:[%s601_s17 + $0x8] sm:$0xff]  ;;  %s1955_s17 = smov 120  }
  0x2c   : > { %632 = vmatpush.msra.mxu0 %v606_v2  ;;  %1687 = vmatpush.msra.mxu3 %v606_v2  ;;  %v1770_v10 = vld [vmem:[%s2558_s20] ss:$0 sm:$0xff]  ;;  %s1685_s20 = sshll.u32 %s2079_s0, 6 }
  0x2d   : > { %1637 = vmatmul.msk.f32.vlgmr.msra.gmra.mxu2 %vm612_vm0, %v2145_v8  ;;  %v1772_v2 = vld [vmem:[%s2516_s6] ss:$0 sm:$0xff] }
  0x2e   : > { %633 = vmatpush.msra.mxu0 %v605_v4  ;;  %1688 = vmatpush.msra.mxu3 %v605_v4 }
  0x2f   : > { %693 = vmatpush.msrb.mxu2 %v676_v35 }
  0x30   : > { %634 = vmatpush.msra.mxu0 %v604_v6  ;;  %1689 = vmatpush.msra.mxu3 %v604_v6 }
  0x31   : > { %1635 = vmatmul.msk.f32.vlgmr.msra.gmra.mxu0 %vm612_vm0, %v2145_v8  ;;  %1636 = vmatmul.msk.f32.vlgmr.msra.gmra.mxu3 %vm612_vm0, %v2147_v9 }
  0x32   : > { %694 = vmatpush.msrb.mxu2 %v675_v36 }
  0x34   : > { %695 = vmatpush.msrb.mxu2 %v674_v37 }
  0x35   : > { %1638 = vmatmul.msk.f32.gmra.mxu2 %vm612_vm0, %v2147_v9 }
  0x36   : > { %696 = vmatpush.msrb.mxu2 %v673_v38 }
  0x3d   : > { %1639 = vmatmul.msk.f32.vlgmr.msrb.gmra.mxu2 %vm612_vm0, %v2145_v8 }
  0x45   : > { %1640 = vmatmul.msk.f32.gmra.mxu2 %vm612_vm0, %v2147_v9 }
  0xae   : > { %v636_v11 = vpop.f32.mrf.mxu0 }
  0xaf   : > { %v637_v12 = vadd.f32 %v1770_v10, %v636_v11 }
  0xb0   : > { %v667_v13 = vpop.f32.mrf.mxu2 }
  0xb1   : > { %822 = vrot.lane.b32.xlu1 %v637_v12, %s1955_s17  ;;  %v668_v19 = vadd.f32 %v1771_v16, %v667_v13 }
  0xb4   : > { %v639_v14 = vpop.f32.mrf.mxu3 }
  0xb5   : > { %v640_v15 = vadd.f32 %v1770_v10, %v639_v14 }
  0xb8   : > { %v670_v17 = vpop.f32.mrf.mxu2 }
  0xb9   : > { %824 = vrot.lane.b32.xlu1 %v640_v15, %s1955_s17  ;;  %v671_v18 = vadd.f32 %v1771_v16, %v670_v17 }
  0xbb   : > { %957 = vrot.lane.b32.xlu2 %v671_v18, %s1956_s11  ;;  %828 = vrot.lane.b32.xlu0 %v671_v18, %s1955_s17 }
  0xbc   : > { %1641 = vmatpush.xpose.msk.msrb.mxu3 %vm704_vm1, %v671_v18 }
  0xc0   : > { %1642 = vmatpush.xpose.msk.msrb.mxu3 %vm704_vm1, %v668_v19  ;;  %v698_v1 = vpop.f32.mrf.mxu2 }
  0xc1   : > { %1082 = vrot.lane.b32.xlu1 %v668_v19, %s1957_s29  ;;  %v699_v10 = vadd.f32 %v1772_v2, %v698_v1 }
  0xc3   : > { %1643 = vmatmul.msk.f32.vlgmr.msrb.gmra.mxu3 %vm704_vm1, %v637_v12  ;;  %1084 = vrot.lane.b32.xlu2 %v671_v18, %s1957_s29 }
  0xc4   : > { %826 = vrot.lane.b32.xlu0 %v668_v19, %s1955_s17 }
  0xc8   : > { %v701_v3 = vpop.f32.mrf.mxu2 }
  0xc9   : > { %953 = vrot.lane.b32.xlu1 %v640_v15, %s1956_s11  ;;  %v702_v6 = vadd.f32 %v1772_v2, %v701_v3 }
  0xcb   : > { %951 = vrot.lane.b32.xlu2 %v637_v12, %s1956_s11  ;;  %1644 = vmatmul.msk.f32.gmra.mxu3 %vm704_vm1, %v640_v15 }
  0xcc   : > { %955 = vrot.lane.b32.xlu0 %v668_v19, %s1956_s11  ;;  %813 = vmatpush.msrb.mxu0 %v702_v6 }
  0xce   : > { %814 = vmatpush.msrb.mxu0 %v699_v10 }
  0xd3   : > { %1080 = vrot.lane.b32.xlu2 %v640_v15, %s1957_s29 }
  0xd4   : > { %1078 = vrot.lane.b32.xlu0 %v637_v12, %s1957_s29 }
 0x115   : > { %v958_v20 = vpop.permute.xlu2 %957 }
 0x116   : > { %1655 = vmatpush.xpose.msk.msra.mxu3 %vm704_vm1, %v958_v20 }
 0x11d   : > { %v1085_v25 = vpop.permute.xlu2 %1084 }
 0x123   : > { %v823_v21 = vpop.permute.xlu1 %822 }
 0x125   : > { %v952_v28 = vpop.permute.xlu2 %951 }
 0x12b   : > { %v825_v23 = vpop.permute.xlu1 %824 }
 0x12d   : > { %v829_v22 = vpop.permute.xlu0 %828  ;;  %v1081_v34 = vpop.permute.xlu2 %1080 }
 0x12e   : > { %1647 = vmatpush.xpose.msk.msra.mxu1 %vm704_vm1, %v829_v22 }
 0x133   : > { %v1083_v26 = vpop.permute.xlu1 %1082 }
 0x136   : > { %v827_v24 = vpop.permute.xlu0 %826 }
 0x137   : > { %1648 = vmatpush.xpose.msk.msra.mxu1 %vm704_vm1, %v827_v24 }
 0x13a   : > { %1649 = vmatmul.msk.f32.vlgmr.msra.gmra.mxu1 %vm704_vm1, %v823_v21  ;;  %v1765_v21 = vpack.i.bf16 %v699_v10, %v702_v6 }
 0x13b   : > { %1663 = vmatpush.xpose.msk.msrb.mxu1 %vm704_vm1, %v1085_v25  ;;  %v954_v31 = vpop.permute.xlu1 %953 }
 0x13e   : > { %v956_v27 = vpop.permute.xlu0 %955 }
 0x13f   : > { %1664 = vmatpush.xpose.msk.msrb.mxu1 %vm704_vm1, %v1083_v26  ;;  %1656 = vmatpush.xpose.msk.msra.mxu3 %vm704_vm1, %v956_v27 }
 0x142   : > { %1650 = vmatmul.msk.f32.gmra.mxu1 %vm704_vm1, %v825_v23  ;;  %1657 = vmatmul.msk.f32.vlgmr.msra.gmra.mxu3 %vm704_vm1, %v952_v28 }
 0x146   : > { %v734_v29 = vpop.f32.mrf.mxu3  ;;  %v1079_v32 = vpop.permute.xlu0 %1078 }
 0x147   : > { %v740_v30 = vmul.f32 0.35355338, %v734_v29 }
 0x149   : > { %v743_v33 = vsel %vm742_vm2, %v740_v30, -inf }
 0x14a   : > { %1658 = vmatmul.msk.f32.gmra.mxu3 %vm704_vm1, %v954_v31  ;;  %1665 = vmatmul.msk.f32.vlgmr.msrb.gmra.mxu1 %vm704_vm1, %v1079_v32 }
 0x14b   : > { %744 = vmax.xlane.f32.xlu1 %v743_v33 }
 0x14e   : > { %v737_v42 = vpop.f32.mrf.mxu3 }
 0x14f   : > { %v741_v47 = vmul.f32 0.35355338, %v737_v42 }
 0x151   : > { %v746_v55 = vsel %vm742_vm2, %v741_v47, -inf }
 0x152   : > { %1666 = vmatmul.msk.f32.gmra.mxu1 %vm704_vm1, %v1081_v34 }
 0x1b7   : > { %v855_v39 = vpop.f32.mrf.mxu1 }
 0x1b8   : > { %v861_v40 = vmul.f32 0.35355338, %v855_v39 }
 0x1ba   : > { %v863_v41 = vsel %vm742_vm2, %v861_v40, -inf }
 0x1bb   : > { %864 = vmax.xlane.f32.xlu0 %v863_v41 }
 0x1be   : > { %v745_v48 = vpop.xlane.xlu1 %744 }
 0x1bf   : > { %v858_v43 = vpop.f32.mrf.mxu1  ;;  %v749_v53 = vsub.f32 %v740_v30, %v745_v48 }
 0x1c0   : > { %v862_v44 = vmul.f32 0.35355338, %v858_v43 }
 0x1c1   : > { %v751_v56 = vmul.f32 1.442695, %v749_v53 }
 0x1c2   : > { %v866_v45 = vsel %vm742_vm2, %v862_v44, -inf }
 0x1c3   : > { %867 = vmax.xlane.f32.xlu2 %v866_v45  ;;  %1780 = vpow2.f32 %v751_v56 }
 0x1c5   : > { %v984_v46 = vpop.f32.mrf.mxu3 }
 0x1c6   : > { %v990_v49 = vmul.f32 0.35355338, %v984_v46 }
 0x1c7   : > { %v1111_v50 = vpop.f32.mrf.mxu1 }
 0x1c8   : > { %v1117_v51 = vmul.f32 0.35355338, %v1111_v50  ;;  %v992_v52 = vsel %vm742_vm2, %v990_v49, -inf }
 0x1c9   : > { %993 = vmax.xlane.f32.xlu1 %v992_v52  ;;  %v2218_v63 = vpop.eup %1780 }
 0x1ca   : > { %v1119_v54 = vsel %vm742_vm2, %v1117_v51, -inf  ;;  %v755_v0 = vsel %vm742_vm2, %v2218_v63, 0.0 }
 0x1cb   : > { %1120 = vmax.xlane.f32.xlu0 %v1119_v54  ;;  %747 = vmax.xlane.f32.xlu2 %v746_v55 }
 0x1cd   : > { %v987_v57 = vpop.f32.mrf.mxu3 }
 0x1ce   : > { %v2213_v58 = vmul.f32 0.35355338, %v987_v57 }
 0x1cf   : > { %v1114_v59 = vpop.f32.mrf.mxu1 }
 0x1d0   : > { %v1118_v60 = vmul.f32 0.35355338, %v1114_v59  ;;  %v995_v61 = vsel %vm742_vm2, %v2213_v58, -inf }
 0x1d2   : > { %v1122_v62 = vsel %vm742_vm2, %v1118_v60, -inf }
 0x1d3   : > { %996 = vmax.xlane.f32.xlu0 %v995_v61  ;;  %1123 = vmax.xlane.f32.xlu2 %v1122_v62 }
 0x1db   : > { %756 = vadd.xlane.f32.xlu2 %v755_v0 }
 0x22e   : > { %v865_v4 = vpop.xlane.xlu0 %864 }
 0x22f   : > { %v869_v19 = vsub.f32 %v861_v40, %v865_v4 }
 0x231   : > { %v871_v22 = vmul.f32 1.442695, %v869_v19 }
 0x236   : > { %v868_v5 = vpop.xlane.xlu2 %867 }
 0x237   : > { %v870_v7 = vsub.f32 %v862_v44, %v868_v5 }
 0x239   : > { %v873_v11 = vmul.f32 1.442695, %v870_v7 }
 0x23b   : > { %1782 = vpow2.f32 %v873_v11 }
 0x23c   : > { %v994_v24 = vpop.xlane.xlu1 %993 }
 0x23d   : > { %v998_v29 = vsub.f32 %v990_v49, %v994_v24 }
 0x23e   : > { %v1121_v12 = vpop.xlane.xlu0 %1120  ;;  %v748_v13 = vpop.xlane.xlu2 %747 }
 0x23f   : > { %v1125_v14 = vsub.f32 %v1117_v51, %v1121_v12  ;;  %v750_v15 = vsub.f32 %v741_v47, %v748_v13  ;;  %v1000_v32 = vmul.f32 1.442695, %v998_v29 }
 0x241   : > { %v2225_v16 = vpop.eup %1782  ;;  %v1127_v17 = vmul.f32 1.442695, %v1125_v14  ;;  %v753_v18 = vmul.f32 1.442695, %v750_v15 }
 0x242   : > { %v878_v20 = vsel %vm742_vm2, %v2225_v16, 0.0 }
 0x243   : > { %1784 = vpow2.f32 %v1127_v17  ;;  %879 = vadd.xlane.f32.xlu0 %v878_v20 }
 0x244   : > { %1786 = vpow2.f32 %v753_v18 }
 0x245   : > { %1788 = vpow2.f32 %v871_v22 }
 0x246   : > { %v1124_v23 = vpop.xlane.xlu2 %1123  ;;  %v997_v34 = vpop.xlane.xlu0 %996 }
 0x247   : > { %v1126_v25 = vsub.f32 %v1118_v60, %v1124_v23  ;;  %v999_v37 = vsub.f32 %v2213_v58, %v997_v34 }
 0x249   : > { %v2229_v26 = vpop.eup %1784  ;;  %v1129_v27 = vmul.f32 1.442695, %v1126_v25  ;;  %v1002_v41 = vmul.f32 1.442695, %v999_v37 }
 0x24a   : > { %v2231_v28 = vpop.eup %1786  ;;  %v1131_v30 = vsel %vm742_vm2, %v2229_v26, 0.0 }
 0x24b   : > { %1132 = vadd.xlane.f32.xlu2 %v1131_v30  ;;  %v758_v31 = vsel %vm742_vm2, %v2231_v28, 0.0  ;;  %1790 = vpow2.f32 %v1129_v27  ;;  %v2237_v35 = vpop.eup %1788 }
 0x24c   : > { %759 = vadd.xlane.f32.xlu1 %v758_v31  ;;  %v875_v38 = vsel %vm742_vm2, %v2237_v35, 0.0 }
 0x24e   : > { %v757_v33 = vpop.xlane.xlu2 %756 }
 0x24f   : > { %1792 = vrcp.f32 %v757_v33  ;;  %v772_v45 = vand.u32 2147483648, %v757_v33  ;;  %v770_v47 = vand.u32 2147483647, %v757_v33  ;;  %vm766_vm4 = vweird.f32 %v757_v33 }
 0x250   : > { %1794 = vpow2.f32 %v1000_v32 }
 0x251   : > { %v2239_v36 = vpop.eup %1790  ;;  %1796 = vpow2.f32 %v1002_v41  ;;  %v773_v50 = vor.u32 1.1754944e-38, %v772_v45  ;;  %vm771_vm6 = vcmp.eq.f32.partialorder %v770_v47, 8.507059e+37 }
 0x252   : > { %v1134_v39 = vsel %vm742_vm2, %v2239_v36, 0.0 }
 0x253   : > { %1135 = vadd.xlane.f32.xlu2 %v1134_v39 }
 0x254   : > { %876 = vadd.xlane.f32.xlu1 %v875_v38 }
 0x255   : > { %v1793_v40 = vpop.eup %1792 }
 0x256   : > { %v762_v42 = vmul.f32 %v1793_v40, %v757_v33  ;;  %v2247_v43 = vpop.eup %1794  ;;  %vm767_vm3 = vweird.f32 %v1793_v40 }
 0x257   : > { %1756 = vrot.lane.b32.xlu0 %v1765_v21, %s1955_s17  ;;  %v1004_v48 = vsel %vm742_vm2, %v2247_v43, 0.0  ;;  %vm768_vm5 = vmor %vm766_vm4, %vm767_vm3  ;;  %v2255_v53 = vpop.eup %1796  ;;  %s2258_s17 = scalar_lea.vmem [#allocation6], %s1632_s27 }
 0x258   : > { %v763_v44 = vsub.f32 1.0, %v762_v42  ;;  %v1007_v55 = vsel %vm742_vm2, %v2255_v53, 0.0  ;;  %s1515_s21 = sshll.u32 %s2258_s17, 4  ;;  %s1516_s21 = int_to_ptr.vmem [resolvable:$true] %s1515_s21 }
 0x25a   : > { %v764_v46 = vmul.f32 %v1793_v40, %v763_v44 }
 0x25c   : > { %v765_v49 = vadd.f32 %v1793_v40, %v764_v46  ;;  %1005 = vadd.xlane.f32.xlu1 %v1004_v48 }
 0x25e   : > { %v769_v51 = vsel %vm768_vm5, %v1793_v40, %v765_v49 }
 0x25f   : > { %v774_v52 = vsel %vm771_vm6, %v773_v50, %v769_v51 }
 0x260   : > { %v775_v54 = vmul.f32 %v2218_v63, %v774_v52 }
 0x262   : > { %791 = vst.msk [vmem:[%s2258_s17] sm:$0xff] %vm742_vm2, %v775_v54  ;;  %1645 = vmatmul.msk.f32.vlgmr.msrb.gmra.mxu0 %vm742_vm2, %v775_v54 }
 0x264   : > { %1008 = vadd.xlane.f32.xlu1 %v1007_v55 }
 0x26b   : > { %1761 = vrot.lane.b32.xlu2 %v1765_v21, %s1957_s29  ;;  %s1959_s29 = smov 16  }
 0x27d   : > { %1766 = vrot.lane.b32.xlu1 %v1765_v21, %s1956_s11  ;;  %s2537_s11 = smov 8  }
 0x2b6   : > { %v880_v56 = vpop.xlane.xlu0 %879 }
 0x2b7   : > { %1798 = vrcp.f32 %v880_v56  ;;  %v907_v63 = vand.u32 2147483648, %v880_v56  ;;  %v905_v0 = vand.u32 2147483647, %v880_v56  ;;  %vm901_vm8 = vweird.f32 %v880_v56 }
 0x2b9   : > { %v908_v4 = vor.u32 1.1754944e-38, %v907_v63  ;;  %vm906_vm10 = vcmp.eq.f32.partialorder %v905_v0, 8.507059e+37 }
 0x2bd   : > { %v1799_v57 = vpop.eup %1798 }
 0x2be   : > { %v897_v58 = vmul.f32 %v1799_v57, %v880_v56  ;;  %v1133_v59 = vpop.xlane.xlu2 %1132  ;;  %vm902_vm7 = vweird.f32 %v1799_v57 }
 0x2bf   : > { %v760_v60 = vpop.xlane.xlu1 %759  ;;  %1800 = vrcp.f32 %v1133_v59  ;;  %vm903_vm9 = vmor %vm901_vm8, %vm902_vm7  ;;  %v1148_v15 = vand.u32 2147483648, %v1133_v59  ;;  %v1146_v19 = vand.u32 2147483647, %v1133_v59  ;;  %vm1142_vm13 = vweird.f32 %v1133_v59 }
 0x2c0   : > { %v898_v61 = vsub.f32 1.0, %v897_v58  ;;  %1802 = vrcp.f32 %v760_v60  ;;  %v787_v24 = vand.u32 2147483648, %v760_v60  ;;  %vm781_vm14 = vweird.f32 %v760_v60 }
 0x2c1   : > { %v1149_v27 = vor.u32 1.1754944e-38, %v1148_v15  ;;  %v785_v30 = vand.u32 2147483647, %v760_v60  ;;  %vm1147_vm3 = vcmp.eq.f32.partialorder %v1146_v19, 8.507059e+37 }
 0x2c2   : > { %v899_v62 = vmul.f32 %v1799_v57, %v898_v61  ;;  %v788_v41 = vor.u32 1.1754944e-38, %v787_v24 }
 0x2c3   : > { %vm786_vm5 = vcmp.eq.f32.partialorder %v785_v30, 8.507059e+37 }
 0x2c4   : > { %v900_v1 = vadd.f32 %v1799_v57, %v899_v62 }
 0x2c5   : > { %v1801_v2 = vpop.eup %1800 }
 0x2c6   : > { %v1803_v3 = vpop.eup %1802  ;;  %v1138_v5 = vmul.f32 %v1801_v2, %v1133_v59  ;;  %v904_v6 = vsel %vm903_vm9, %v1799_v57, %v900_v1  ;;  %v2269_v11 = vpop.xlane.xlu2 %1135  ;;  %vm1143_vm11 = vweird.f32 %v1801_v2 }
 0x2c7   : > { %v777_v7 = vmul.f32 %v1803_v3, %v760_v60  ;;  %v2267_v10 = vpop.xlane.xlu1 %876  ;;  %v909_v13 = vsel %vm906_vm10, %v908_v4, %v904_v6  ;;  %vm782_vm12 = vweird.f32 %v1803_v3  ;;  %vm1144_vm15 = vmor %vm1142_vm13, %vm1143_vm11  ;;  %v1163_v56 = vand.u32 2147483648, %v2269_v11 }
 0x2c8   : > { %v1139_v12 = vsub.f32 1.0, %v1138_v5  ;;  %1804 = vrcp.f32 %v2267_v10  ;;  %v2274_v23 = vmul.f32 %v2225_v16, %v909_v13  ;;  %vm2280_vm4 = vmor %vm781_vm14, %vm782_vm12  ;;  %v890_v45 = vand.u32 2147483647, %v2267_v10 }
 0x2c9   : > { %v778_v14 = vsub.f32 1.0, %v777_v7  ;;  %1806 = vrcp.f32 %v2269_v11  ;;  %v1757_v17 = vpop.permute.xlu0 %1756  ;;  %v892_v47 = vand.u32 2147483648, %v2267_v10  ;;  %vm886_vm7 = vweird.f32 %v2267_v10 }
 0x2ca   : > { %v1140_v18 = vmul.f32 %v1801_v2, %v1139_v12  ;;  %v1759_v21 = vunpack.i.h.bf16 %v1757_v17  ;;  %v1758_v22 = vunpack.i.l.bf16 %v1757_v17  ;;  %1652 = vst.msk [vmem:[%s2258_s17 + $0x18] sm:$0xff] %vm742_vm2, %v2274_v23  ;;  %vm891_vm10 = vcmp.eq.f32.partialorder %v890_v45, 8.507059e+37 }
 0x2cb   : > { %v779_v20 = vmul.f32 %v1803_v3, %v778_v14  ;;  %vm1157_vm11 = vweird.f32 %v2269_v11  ;;  %v1164_v0 = vor.u32 1.1754944e-38, %v1163_v56  ;;  %v1773_v56 = vld [vmem:[%s2518_s8] ss:$0 sm:$0xff] }
 0x2cc   : > { %v1141_v25 = vadd.f32 %v1801_v2, %v1140_v18  ;;  %942 = vmatpush.msra.mxu2 %v1758_v22 }
 0x2cd   : > { %v780_v29 = vadd.f32 %v1803_v3, %v779_v20 }
 0x2ce   : > { %v1805_v31 = vpop.eup %1804  ;;  %v1145_v32 = vsel %vm1144_vm15, %v1801_v2, %v1141_v25  ;;  %v1762_v39 = vpop.permute.xlu2 %1761  ;;  %943 = vmatpush.msra.mxu2 %v1759_v21 }
 0x2cf   : > { %v1807_v16 = vpop.eup %1806  ;;  %v1150_v34 = vsel %vm1147_vm3, %v1149_v27, %v1145_v32  ;;  %v882_v37 = vmul.f32 %v1805_v31, %v2267_v10  ;;  %v2285_v38 = vpop.xlane.xlu1 %1005  ;;  %v784_v40 = vsel %vm2280_vm4, %v1803_v3, %v780_v29  ;;  %v1763_v46 = vunpack.i.l.bf16 %v1762_v39 }
 0x2d0   : > { %v1153_v42 = vmul.f32 %v1807_v16, %v2269_v11  ;;  %1808 = vrcp.f32 %v2285_v38  ;;  %v789_v49 = vsel %vm786_vm5, %v788_v41, %v784_v40  ;;  %v2294_v50 = vmul.f32 %v2229_v26, %v1150_v34  ;;  %v1237_v40 = vld [vmem:[%s2517_s7 + $0x8] sm:$0xff]  ;;  %v1236_v41 = vld [vmem:[%s2517_s7] sm:$0xff] }
 0x2d1   : > { %v883_v44 = vsub.f32 1.0, %v882_v37  ;;  %vm887_vm6 = vweird.f32 %v1805_v31  ;;  %v1764_v52 = vunpack.i.h.bf16 %v1762_v39  ;;  %1196 = vmatpush.msrb.mxu2 %v1763_v46  ;;  %v790_v54 = vmul.f32 %v2231_v28, %v789_v49  ;;  %v1238_v39 = vld [vmem:[%s2517_s7 + $0x10] sm:$0xff] }
 0x2d2   : > { %v1154_v48 = vsub.f32 1.0, %v1153_v42  ;;  %1667 = vst.msk [vmem:[%s2258_s17 + $0x30] sm:$0xff] %vm742_vm2, %v2294_v50  ;;  %vm1158_vm8 = vweird.f32 %v1807_v16  ;;  %v1161_v26 = vand.u32 2147483647, %v2269_v11  ;;  %vm888_vm9 = vmor %vm886_vm7, %vm887_vm6  ;;  %v893_v28 = vor.u32 1.1754944e-38, %v892_v47 }
 0x2d3   : > { %v884_v51 = vmul.f32 %v1805_v31, %v883_v44  ;;  %792 = vst.msk [vmem:[%s2258_s17 + $0x8] sm:$0xff] %vm742_vm2, %v790_v54  ;;  %1646 = vmatmul.msk.f32.gmra.mxu0 %vm742_vm2, %v790_v54  ;;  %1197 = vmatpush.msrb.mxu2 %v1764_v52  ;;  %vm1159_vm12 = vmor %vm1157_vm11, %vm1158_vm8  ;;  %v1021_v4 = vand.u32 2147483648, %v2285_v38  ;;  %v1019_v7 = vand.u32 2147483647, %v2285_v38  ;;  %vm1015_vm15 = vweird.f32 %v2285_v38 }
 0x2d4   : > { %v1155_v55 = vmul.f32 %v1807_v16, %v1154_v48  ;;  %vm1162_vm13 = vcmp.eq.f32.partialorder %v1161_v26, 8.507059e+37 }
 0x2d5   : > { %v885_v57 = vadd.f32 %v1805_v31, %v884_v51  ;;  %v1022_v12 = vor.u32 1.1754944e-38, %v1021_v4  ;;  %vm1020_vm4 = vcmp.eq.f32.partialorder %v1019_v7, 8.507059e+37 }
 0x2d6   : > { %v1809_v58 = vpop.eup %1808  ;;  %v1156_v59 = vadd.f32 %v1807_v16, %v1155_v55 }
 0x2d7   : > { %v889_v60 = vsel %vm888_vm9, %v1805_v31, %v885_v57  ;;  %v1011_v61 = vmul.f32 %v1809_v58, %v2285_v38  ;;  %v1009_v62 = vpop.xlane.xlu1 %1008  ;;  %vm1016_vm14 = vweird.f32 %v1809_v58  ;;  %v1239_v38 = vld [vmem:[%s2517_s7 + $0x18] sm:$0xff]  ;;  %vm1233_vm9 = vcmask 195584  }
 0x2d8   : > { %v894_v63 = vsel %vm891_vm10, %v893_v28, %v889_v60  ;;  %1810 = vrcp.f32 %v1009_v62  ;;  %v1160_v3 = vsel %vm1159_vm12, %v1807_v16, %v1156_v59  ;;  %vm1017_vm3 = vmor %vm1015_vm15, %vm1016_vm14  ;;  %v1036_v19 = vand.u32 2147483648, %v1009_v62  ;;  %1262 = vmatpush.msrb.mxu3 %v1239_v38 }
 0x2d9   : > { %v1012_v1 = vsub.f32 1.0, %v1011_v61  ;;  %v895_v2 = vmul.f32 %v2237_v35, %v894_v63  ;;  %v1165_v5 = vsel %vm1162_vm13, %v1164_v0, %v1160_v3  ;;  %vm1030_vm6 = vweird.f32 %v1009_v62 }
 0x2da   : > { %v1166_v10 = vmul.f32 %v2239_v36, %v1165_v5  ;;  %v1034_v36 = vand.u32 2147483647, %v1009_v62  ;;  %v1037_v22 = vor.u32 1.1754944e-38, %v1036_v19  ;;  %1263 = vmatpush.msrb.mxu3 %v1238_v39  ;;  %v1961_v63 = vmov 32.0   ;;  %v1338_v19 = vld [vmem:[#allocation2] sm:$0xff] }
 0x2db   : > { %v1013_v6 = vmul.f32 %v1809_v58, %v1012_v1  ;;  %1651 = vst.msk [vmem:[%s2258_s17 + $0x10] sm:$0xff] %vm742_vm2, %v895_v2  ;;  %1653 = vmatmul.msk.f32.vlgmr.msra.gmra.mxu2 %vm742_vm2, %v895_v2  ;;  %1812 = vrcp.f32 %v1961_v63  ;;  %v1377_v63 = vld [vmem:[%s2523_s13] sm:$0xff] }
 0x2dc   : > { %1668 = vst.msk [vmem:[%s2258_s17 + $0x38] sm:$0xff] %vm742_vm2, %v1166_v10  ;;  %vm1035_vm8 = vcmp.eq.f32.partialorder %v1034_v36, 8.507059e+37  ;;  %1264 = vmatpush.msrb.mxu3 %v1237_v40  ;;  %v1384_v40 = vld [vmem:[%s2523_s13 + $0x38] sm:$0xff] }
 0x2dd   : > { %v1014_v11 = vadd.f32 %v1809_v58, %v1013_v6 }
 0x2de   : > { %v1811_v35 = vpop.eup %1810  ;;  %1265 = vmatpush.msrb.mxu3 %v1236_v41 }
 0x2df   : > { %v1018_v13 = vsel %vm1017_vm3, %v1809_v58, %v1014_v11  ;;  %v1026_v14 = vmul.f32 %v1811_v35, %v1009_v62  ;;  %vm1031_vm5 = vweird.f32 %v1811_v35 }
 0x2e0   : > { %v1023_v15 = vsel %vm1020_vm4, %v1022_v12, %v1018_v13  ;;  %vm1032_vm7 = vmor %vm1030_vm6, %vm1031_vm5 }
 0x2e1   : > { %v1027_v17 = vsub.f32 1.0, %v1026_v14  ;;  %v1024_v18 = vmul.f32 %v2247_v43, %v1023_v15  ;;  %v1813_v0 = vpop.eup %1812  ;;  %v1341_v15 = vld [vmem:[#allocation2 + $0x18] sm:$0xff] }
 0x2e2   : > { %v1282_v1 = vmul.f32 32.0, %v1813_v0 }
 0x2e3   : > { %v1028_v20 = vmul.f32 %v1811_v35, %v1027_v17  ;;  %1654 = vmatmul.msk.f32.gmra.mxu2 %vm742_vm2, %v2274_v23  ;;  %1659 = vst.msk [vmem:[%s2258_s17 + $0x20] sm:$0xff] %vm742_vm2, %v1024_v18  ;;  %v1340_v17 = vld [vmem:[#allocation2 + $0x10] sm:$0xff] }
 0x2e4   : > { %v1283_v2 = vsub.f32 1.0, %v1282_v1 }
 0x2e5   : > { %v1029_v21 = vadd.f32 %v1811_v35, %v1028_v20 }
 0x2e6   : > { %v1284_v3 = vmul.f32 %v1813_v0, %v1283_v2 }
 0x2e7   : > { %v1033_v24 = vsel %vm1032_vm7, %v1811_v35, %v1029_v21 }
 0x2e8   : > { %v1038_v25 = vsel %vm1035_vm8, %v1037_v22, %v1033_v24  ;;  %v1285_v4 = vadd.f32 %v1813_v0, %v1284_v3  ;;  %v1392_v22 = vld [vmem:[%s2523_s13 + $0x78] sm:$0xff]  ;;  %v1391_v24 = vld [vmem:[%s2523_s13 + $0x70] sm:$0xff] }
 0x2e9   : > { %v1039_v27 = vmul.f32 %v2255_v53, %v1038_v25  ;;  %v816_v53 = vpop.f32.mrf.mxu0  ;;  %1397 = vmatpush.msra.mxu1 %v1392_v22  ;;  %v1390_v25 = vld [vmem:[%s2523_s13 + $0x68] sm:$0xff] }
 0x2eb   : > { %1669 = vmatmul.msk.f32.vlgmr.msrb.gmra.mxu2 %vm742_vm2, %v2294_v50  ;;  %1660 = vst.msk [vmem:[%s2258_s17 + $0x28] sm:$0xff] %vm742_vm2, %v1039_v27  ;;  %1398 = vmatpush.msra.mxu1 %v1391_v24 }
 0x2ed   : > { %1399 = vmatpush.msra.mxu1 %v1390_v25 }
 0x2ef   : > { %v1767_v43 = vpop.permute.xlu1 %1766 }
 0x2f0   : > { %v1768_v23 = vunpack.i.l.bf16 %v1767_v43  ;;  %v1769_v29 = vunpack.i.h.bf16 %v1767_v43 }
 0x2f2   : > { %1069 = vmatpush.msra.mxu0 %v1768_v23  ;;  %v1389_v23 = vld [vmem:[%s2523_s13 + $0x60] sm:$0xff] }
 0x2f3   : > { %1670 = vmatmul.msk.f32.gmra.mxu2 %vm742_vm2, %v1166_v10  ;;  %1400 = vmatpush.msra.mxu1 %v1389_v23 }
 0x2f4   : > { %1070 = vmatpush.msra.mxu0 %v1769_v29 }
 0x2f5   : > { %1661 = vmatmul.msk.f32.vlgmr.msra.gmra.mxu0 %vm742_vm2, %v1024_v18  ;;  %v1339_v18 = vld [vmem:[#allocation2 + $0x8] sm:$0xff] }
 0x2f6   : > { %1364 = vmatpush.msrb.mxu0 %v1341_v15 }
 0x2f8   : > { %1365 = vmatpush.msrb.mxu0 %v1340_v17 }
 0x2fa   : > { %1366 = vmatpush.msrb.mxu0 %v1339_v18 }
 0x2fc   : > { %1367 = vmatpush.msrb.mxu0 %v1338_v19 }
 0x2fd   : > { %1662 = vmatmul.msk.f32.gmra.mxu0 %vm742_vm2, %v1039_v27 }
 0x350   : > { %v819_v32 = vpop.f32.mrf.mxu0 }
 0x35e   : > { %v945_v30 = vpop.f32.mrf.mxu2 }
 0x35f   : > { %1207 = vrot.lane.b32.xlu0 %v945_v30, %s2537_s11 }
 0x366   : > { %v948_v31 = vpop.f32.mrf.mxu2 }
 0x367   : > { %1209 = vrot.lane.b32.xlu2 %v948_v31, %s2537_s11  ;;  %s1872_s11 = scalar_lea.hbm %s2528_s18, 128 }
 0x36e   : > { %v1199_v16 = vpop.f32.mrf.mxu2 }
 0x372   : > { %v1072_v33 = vpop.f32.mrf.mxu0 }
 0x373   : > { %1215 = vrot.lane.b32.xlu0 %v1072_v33, %s1959_s29 }
 0x376   : > { %v1202_v37 = vpop.f32.mrf.mxu2 }
 0x37a   : > { %v1075_v34 = vpop.f32.mrf.mxu0 }
 0x37b   : > { %1217 = vrot.lane.b32.xlu1 %v1075_v34, %s1959_s29  ;;  %1223 = vrot.lane.b32.xlu0 %v1199_v16, %s1960_s23  ;;  %v1386_v16 = vld [vmem:[%s2523_s13 + $0x48] sm:$0xff] }
 0x383   : > { %1225 = vrot.lane.b32.xlu0 %v1202_v37, %s1960_s23  ;;  %v1385_v37 = vld [vmem:[%s2523_s13 + $0x40] sm:$0xff]  ;;  %s1514_s23 = scalar_lea.hbm %s2528_s18, %s1685_s20 }
 0x384   : > { %s1517_s19 = sshll.u32 %s1514_s23, 4  ;;  %s1518_s19 = int_to_ptr.hbm [resolvable:$true] %s1517_s19 }
 0x385   : > { %s1866_s30 = sshra.s32 %s1518_s19, 4  ;;  %s1867_s30 = int_to_ptr.hbm [resolvable:$true] %s1866_s30 }
 0x386   : > { %s1868_s25 = scalar_lea.hbm %s1867_s30, 64  ;;  %p1873_p3 = scmp.lt.s32.totalorder %s1867_s30, %s2528_s18 }
 0x387   : > { %p1869_p0 = scmp.ne.s32.totalorder %s1867_s30, %s1868_s25  ;;  %p1874_p4 = scmp.lt.s32.totalorder %s1872_s11, %s1868_s25 }
 0x389   : > { %p1870_p1 = pnand %p1869_p0, %p2096_p5  ;;  %p1875_p7 = por %p1874_p4, %p1873_p3 }
 0x38b   : > { %p1871_p2 = pneg %p1870_p1 }
 0x38d   : > { %p1876_p8 = pnand %p1875_p7, %p1871_p2 }
 0x3c1   : > { %v1210_v49 = vpop.permute.xlu2 %1209 }
 0x3c2   : > { %v1230_v51 = vsel %vm704_vm1, %v819_v32, %v1210_v49  ;;  %v1387_v32 = vld [vmem:[%s2523_s13 + $0x50] sm:$0xff]  ;;  %v1775_v49 = vld [vmem:[%s2520_s10] ss:$0 sm:$0xff] }
 0x3d1   : > { %v1208_v42 = vpop.permute.xlu0 %1207 }
 0x3d2   : > { %v1229_v45 = vsel %vm704_vm1, %v816_v53, %v1208_v42  ;;  %vm1286_vm1 = vweird.f32 %v1813_v0  ;;  %v1388_v53 = vld [vmem:[%s2523_s13 + $0x58] sm:$0xff] }
 0x3d3   : > { %v2359_v5 = vsel %vm1286_vm1, %v1813_v0, %v1285_v4  ;;  %1401 = vmatpush.msra.mxu1 %v1388_v53  ;;  %v1776_v0 = vld [vmem:[%s2522_s12] ss:$0 sm:$0xff] }
 0x3d5   : > { %1402 = vmatpush.msra.mxu1 %v1387_v32 }
 0x3d7   : > { %1403 = vmatpush.msra.mxu1 %v1386_v16 }
 0x3d9   : > { %1404 = vmatpush.msra.mxu1 %v1385_v37 }
 0x3db   : > { %1405 = vmatpush.msra.mxu1 %v1384_v40 }
 0x3e5   : > { %v1216_v44 = vpop.permute.xlu0 %1215 }
 0x3e6   : > { %v1231_v46 = vsel %vm742_vm2, %v1229_v45, %v1216_v44  ;;  %v1774_v44 = vld [vmem:[%s2519_s9] ss:$0 sm:$0xff]  ;;  %v1383_v45 = vld [vmem:[%s2523_s13 + $0x30] sm:$0xff] }
 0x3e7   : > { %1406 = vmatpush.msra.mxu1 %v1383_v45 }
 0x3ed   : > { %v1224_v47 = vpop.permute.xlu0 %1223  ;;  %v1218_v50 = vpop.permute.xlu1 %1217 }
 0x3ee   : > { %v1234_v48 = vsel %vm1233_vm9, %v1231_v46, %v1224_v47  ;;  %v1232_v52 = vsel %vm742_vm2, %v1230_v51, %v1218_v50  ;;  %v1382_v50 = vld [vmem:[%s2523_s13 + $0x28] sm:$0xff] }
 0x3ef   : > { %1671 = vmatmul.msk.f32.vlgmr.msrb.gmra.mxu3 %vm612_vm0, %v1234_v48  ;;  %1407 = vmatpush.msra.mxu1 %v1382_v50 }
 0x3f5   : > { %v1226_v54 = vpop.permute.xlu0 %1225 }
 0x3f6   : > { %v1235_v55 = vsel %vm1233_vm9, %v1232_v52, %v1226_v54  ;;  %v1381_v54 = vld [vmem:[%s2523_s13 + $0x20] sm:$0xff] }
 0x3f7   : > { %1672 = vmatmul.msk.f32.gmra.mxu3 %vm612_vm0, %v1235_v55  ;;  %1408 = vmatpush.msra.mxu1 %v1381_v54 }
 0x472   : > { %v1267_v57 = vpop.f32.mrf.mxu3 }
 0x473   : > { %v1268_v26 = vadd.f32 %v1773_v56, %v1267_v57  ;;  %v1380_v57 = vld [vmem:[%s2523_s13 + $0x18] sm:$0xff] }
 0x474   : > { %1409 = vmatpush.msra.mxu1 %v1380_v57 }
 0x475   : > { %v1273_v58 = vadd.f32 %v1268_v26, %v2145_v8 }
 0x477   : > { %v1275_v28 = vsel %vm612_vm0, %v1273_v58, 0.0 }
 0x478   : > { %1276 = vadd.xlane.f32.xlu2 %v1275_v28 }
 0x47a   : > { %v1270_v59 = vpop.f32.mrf.mxu3 }
 0x47b   : > { %v1271_v60 = vadd.f32 %v1773_v56, %v1270_v59 }
 0x47d   : > { %v1274_v61 = vadd.f32 %v1271_v60, %v2147_v9 }
 0x47f   : > { %v1278_v62 = vsel %vm612_vm0, %v1274_v61, 0.0 }
 0x480   : > { %1279 = vadd.xlane.f32.xlu1 %v1278_v62  ;;  %v1378_v62 = vld [vmem:[%s2523_s13 + $0x8] sm:$0xff] }
 0x4eb   : > { %v1277_v8 = vpop.xlane.xlu2 %1276 }
 0x4ec   : > { %v1288_v6 = vmul.f32 %v2359_v5, %v1277_v8 }
 0x4ee   : > { %v1290_v7 = vsub.f32 %v1273_v58, %v1288_v6 }
 0x4f0   : > { %v1292_v10 = vmul.f32 %v1290_v7, %v1290_v7 }
 0x4f2   : > { %v1294_v9 = vsel %vm612_vm0, %v1292_v10, 0.0 }
 0x4f3   : > { %1295 = vadd.xlane.f32.xlu0 %v1294_v9  ;;  %v1280_v11 = vpop.xlane.xlu1 %1279 }
 0x4f4   : > { %v1289_v35 = vmul.f32 %v2359_v5, %v1280_v11 }
 0x4f6   : > { %v2364_v12 = vsub.f32 %v1274_v61, %v1289_v35  ;;  %v1379_v61 = vld [vmem:[%s2523_s13 + $0x10] sm:$0xff] }
 0x4f7   : > { %1410 = vmatpush.msra.mxu1 %v1379_v61 }
 0x4f8   : > { %v1293_v13 = vmul.f32 %v2364_v12, %v2364_v12 }
 0x4f9   : > { %1411 = vmatpush.msra.mxu1 %v1378_v62 }
 0x4fa   : > { %v1297_v14 = vsel %vm612_vm0, %v1293_v13, 0.0 }
 0x4fb   : > { %1298 = vadd.xlane.f32.xlu2 %v1297_v14  ;;  %1412 = vmatpush.msra.mxu1 %v1377_v63 }
 0x566   : > { %v1296_v20 = vpop.xlane.xlu0 %1295 }
 0x567   : > { %v1300_v36 = vmul.f32 %v1296_v20, %v2359_v5 }
 0x569   : > { %v1302_v21 = vadd.f32 1e-05, %v1300_v36 }
 0x56b   : > { %1814 = vrsqrt.f32 %v1302_v21  ;;  %vm1310_vm10 = vweird.f32 %v1302_v21 }
 0x56e   : > { %v1299_v27 = vpop.xlane.xlu2 %1298 }
 0x56f   : > { %v1301_v43 = vmul.f32 %v1299_v27, %v2359_v5 }
 0x571   : > { %v1815_v29 = vpop.eup %1814  ;;  %v1303_v30 = vadd.f32 1e-05, %v1301_v43 }
 0x572   : > { %v1305_v31 = vmul.f32 %v1815_v29, %v1302_v21  ;;  %vm1311_vm2 = vweird.f32 %v1815_v29 }
 0x573   : > { %1816 = vrsqrt.f32 %v1303_v30  ;;  %vm1312_vm11 = vmor %vm1310_vm10, %vm1311_vm2  ;;  %vm1320_vm13 = vweird.f32 %v1303_v30 }
 0x574   : > { %v1306_v33 = vmul.f32 %v1815_v29, %v1305_v31 }
 0x576   : > { %v1307_v34 = vmul.f32 0.5, %v1306_v33 }
 0x578   : > { %v1308_v38 = vsub.f32 1.5, %v1307_v34 }
 0x579   : > { %v1817_v39 = vpop.eup %1816 }
 0x57a   : > { %v1309_v41 = vmul.f32 %v1815_v29, %v1308_v38  ;;  %v1315_v42 = vmul.f32 %v1817_v39, %v1303_v30  ;;  %vm1321_vm12 = vweird.f32 %v1817_v39 }
 0x57b   : > { %vm1322_vm14 = vmor %vm1320_vm13, %vm1321_vm12 }
 0x57c   : > { %v1313_v46 = vsel %vm1312_vm11, %v1815_v29, %v1309_v41  ;;  %v1316_v47 = vmul.f32 %v1817_v39, %v1315_v42 }
 0x57d   : > { %v1324_v48 = vmul.f32 %v1313_v46, %v1290_v7  ;;  %v1777_v7 = vld [vmem:[%s2524_s14] ss:$0 sm:$0xff] }
 0x57e   : > { %v1317_v51 = vmul.f32 0.5, %v1316_v47 }
 0x57f   : > { %v1330_v52 = vmul.f32 %v1774_v44, %v1324_v48 }
 0x580   : > { %v1318_v55 = vsub.f32 1.5, %v1317_v51 }
 0x581   : > { %v1336_v56 = vadd.f32 %v1775_v49, %v1330_v52 }
 0x582   : > { %v1319_v26 = vmul.f32 %v1817_v39, %v1318_v55 }
 0x583   : > { %1673 = vmatmul.msk.f32.vlgmr.msrb.gmra.mxu0 %vm612_vm0, %v1336_v56 }
 0x584   : > { %v1323_v58 = vsel %vm1322_vm14, %v1817_v39, %v1319_v26 }
 0x585   : > { %v1325_v28 = vmul.f32 %v1323_v58, %v2364_v12 }
 0x587   : > { %v1331_v59 = vmul.f32 %v1774_v44, %v1325_v28 }
 0x589   : > { %v1337_v60 = vadd.f32 %v1775_v49, %v1331_v59 }
 0x58b   : > { %1674 = vmatmul.msk.f32.gmra.mxu0 %vm612_vm0, %v1337_v60 }
 0x600   : > { %v1369_v1 = vpop.f32.mrf.mxu0 }
 0x601   : > { %v1370_v2 = vadd.f32 %v1776_v0, %v1369_v1 }
 0x603   : > { %v1375_v3 = vmax.f32 %v1370_v2, 0.0 }
 0x605   : > { %1413 = vmatmul.f32.vlgmr.msra.gmra.mxu1 %v1375_v3 }
 0x608   : > { %v1372_v4 = vpop.f32.mrf.mxu0 }
 0x609   : > { %v1373_v8 = vadd.f32 %v1776_v0, %v1372_v4 }
 0x60b   : > { %v1376_v6 = vmax.f32 %v1373_v8, 0.0 }
 0x60d   : > { %1416 = vmatmul.f32.gmra.mxu1 %v1376_v6 }
 0x682   : > { %v1414_v10 = vpop.f32.mrf.mxu1 }
 0x683   : > { %v1415_v9 = vadd.f32 %v1777_v7, %v1414_v10 }
 0x685   : > { %v1420_v11 = vadd.f32 %v1415_v9, %v1336_v56 }
 0x687   : > { %v1422_v35 = vsel %vm612_vm0, %v1420_v11, 0.0 }
 0x688   : > { %1423 = vadd.xlane.f32.xlu1 %v1422_v35 }
 0x68a   : > { %v1417_v12 = vpop.f32.mrf.mxu1 }
 0x68b   : > { %v1418_v13 = vadd.f32 %v1777_v7, %v1417_v12 }
 0x68d   : > { %v1421_v14 = vadd.f32 %v1418_v13, %v1337_v60 }
 0x68f   : > { %v1425_v15 = vsel %vm612_vm0, %v1421_v14, 0.0 }
 0x690   : > { %1426 = vadd.xlane.f32.xlu0 %v1425_v15 }
 0x6fb   : > { %v1424_v17 = vpop.xlane.xlu1 %1423 }
 0x6fc   : > { %v1428_v18 = vmul.f32 %v1424_v17, %v2359_v5 }
 0x6fe   : > { %v1430_v19 = vsub.f32 %v1420_v11, %v1428_v18 }
 0x700   : > { %v1432_v20 = vmul.f32 %v1430_v19, %v1430_v19 }
 0x702   : > { %v1434_v36 = vsel %vm612_vm0, %v1432_v20, 0.0 }
 0x703   : > { %v1427_v21 = vpop.xlane.xlu0 %1426  ;;  %1435 = vadd.xlane.f32.xlu2 %v1434_v36 }
 0x704   : > { %v1429_v22 = vmul.f32 %v1427_v21, %v2359_v5 }
 0x706   : > { %v2439_v24 = vsub.f32 %v1421_v14, %v1429_v22 }
 0x708   : > { %v1433_v25 = vmul.f32 %v2439_v24, %v2439_v24 }
 0x70a   : > { %v1437_v27 = vsel %vm612_vm0, %v1433_v25, 0.0 }
 0x70b   : > { %1438 = vadd.xlane.f32.xlu1 %v1437_v27 }
 0x70c   : > { %1879 = shalt.err (!%p1876_p8)
}
 0x70d   : > { %s1962_s20 = smov 128   ;;  %s2561_s27 = smov 8   ;;  %v1778_v41 = vld [vmem:[%s2525_s15] ss:$0 sm:$0xff] }
 0x70e   : > { %1695 = dma.vmem_to_hbm [thread:$0]  (%p2096_p5), %s1516_s21, 1024, %s1518_s19, %s1486_s22, %s1962_s20, %s1962_s20, %s2561_s27  }
 0x70f   : > { %s2562_s23 = sld [smem:[#allocation21_spill]]  ;;  %s1631_s19 = sshll.u32 %s2250_s24, 4 }
 0x710   : > { %s1684_s22 = sshll.u32 %s2079_s0, 4  ;;  %s589_s30 = scalar_lea.vmem [#allocation5], %s1631_s19 }
 0x711   : > { %s2563_s26 = sld [smem:[#allocation22_spill]]  ;;  %s1498_s1 = sshll.u32 %s589_s30, 4  ;;  %s1499_s1 = int_to_ptr.vmem [resolvable:$true] %s1498_s1 }
 0x712   : > { %s1481_s0 = scalar_lea.sflag [#allocation4], %s2250_s24 }
 0x715   : > { %v1779_v44 = vld [vmem:[%s2562_s23] ss:$0 sm:$0xff] }
 0x717   : > { %s1497_s17 = scalar_lea.hbm %s2563_s26, %s1684_s22  ;;  %s1900_s22 = scalar_lea.hbm %s2563_s26, 32 }
 0x718   : > { %s1500_s11 = sshll.u32 %s1497_s17, 4  ;;  %s1501_s11 = int_to_ptr.hbm [resolvable:$true] %s1500_s11 }
 0x719   : > { %s1894_s21 = sshra.s32 %s1501_s11, 4  ;;  %s1895_s21 = int_to_ptr.hbm [resolvable:$true] %s1894_s21 }
 0x71a   : > { %s1896_s29 = scalar_lea.hbm %s1895_s21, 16  ;;  %p1901_p12 = scmp.lt.s32.totalorder %s1895_s21, %s2563_s26 }
 0x71b   : > { %p1897_p9 = scmp.ne.s32.totalorder %s1895_s21, %s1896_s29  ;;  %p1902_p13 = scmp.lt.s32.totalorder %s1900_s22, %s1896_s29 }
 0x71d   : > { %p1898_p10 = pnand %p1897_p9, %p2096_p5  ;;  %p1903_p0 = por %p1902_p13, %p1901_p12 }
 0x71f   : > { %p1899_p11 = pneg %p1898_p10 }
 0x721   : > { %p1904_p1 = pnand %p1903_p0, %p1899_p11 }
 0x776   : > { %v1436_v43 = vpop.xlane.xlu2 %1435 }
 0x777   : > { %v1440_v23 = vmul.f32 %v1436_v43, %v2359_v5 }
 0x779   : > { %v1442_v29 = vadd.f32 1e-05, %v1440_v23 }
 0x77b   : > { %1818 = vrsqrt.f32 %v1442_v29  ;;  %vm1450_vm3 = vweird.f32 %v1442_v29 }
 0x77e   : > { %v1439_v30 = vpop.xlane.xlu1 %1438 }
 0x77f   : > { %v1441_v53 = vmul.f32 %v1439_v30, %v2359_v5 }
 0x781   : > { %v1819_v31 = vpop.eup %1818  ;;  %v1443_v32 = vadd.f32 1e-05, %v1441_v53 }
 0x782   : > { %v1445_v33 = vmul.f32 %v1819_v31, %v1442_v29  ;;  %vm1451_vm15 = vweird.f32 %v1819_v31 }
 0x783   : > { %1820 = vrsqrt.f32 %v1443_v32  ;;  %vm1452_vm4 = vmor %vm1450_vm3, %vm1451_vm15  ;;  %vm1460_vm6 = vweird.f32 %v1443_v32 }
 0x784   : > { %v1446_v16 = vmul.f32 %v1819_v31, %v1445_v33 }
 0x786   : > { %v1447_v34 = vmul.f32 0.5, %v1446_v16 }
 0x788   : > { %v1448_v37 = vsub.f32 1.5, %v1447_v34 }
 0x789   : > { %v1821_v38 = vpop.eup %1820 }
 0x78a   : > { %v1449_v39 = vmul.f32 %v1819_v31, %v1448_v37  ;;  %v1455_v40 = vmul.f32 %v1821_v38, %v1443_v32  ;;  %vm1461_vm5 = vweird.f32 %v1821_v38 }
 0x78b   : > { %vm1462_vm7 = vmor %vm1460_vm6, %vm1461_vm5 }
 0x78c   : > { %v1453_v5 = vsel %vm1452_vm4, %v1819_v31, %v1449_v39  ;;  %v1456_v42 = vmul.f32 %v1821_v38, %v1455_v40 }
 0x78d   : > { %v1464_v45 = vmul.f32 %v1453_v5, %v1430_v19 }
 0x78e   : > { %v1457_v46 = vmul.f32 0.5, %v1456_v42 }
 0x78f   : > { %v1470_v47 = vmul.f32 %v1778_v41, %v1464_v45 }
 0x790   : > { %v1458_v48 = vsub.f32 1.5, %v1457_v46 }
 0x791   : > { %v1476_v49 = vadd.f32 %v1779_v44, %v1470_v47 }
 0x792   : > { %v1459_v50 = vmul.f32 %v1821_v38, %v1458_v48 }
 0x793   : > { %1478 = vst.msk [vmem:[%s589_s30] sm:$0xff] %vm612_vm0, %v1476_v49 }
 0x794   : > { %v1463_v51 = vsel %vm1462_vm7, %v1821_v38, %v1459_v50 }
 0x795   : > { %v1465_v52 = vmul.f32 %v1463_v51, %v2439_v24 }
 0x797   : > { %v1471_v54 = vmul.f32 %v1778_v41, %v1465_v52 }
 0x799   : > { %v1477_v55 = vadd.f32 %v1779_v44, %v1471_v54 }
 0x79b   : > { %1479 = vst.msk [vmem:[%s589_s30 + $0x8] sm:$0xff] %vm612_vm0, %v1477_v55 }
 0x79c   : > { %1907 = shalt.err (!%p1904_p1)
}
 0x79d   : > { %1694 = dma.vmem_to_hbm [thread:$0]  (%p2096_p5), %s1499_s1, 256, %s1501_s11, %s1481_s0, %s1962_s20, %s1962_s20, %s2561_s27  }
 0x79e PF: > { %s2564_s24 = sld [smem:[#allocation13_spill]] }
 0x79f   : > { %s2565_s30 = sld [smem:[#allocation11_spill]] }
 0x7a4   : > { %p1711_p2 = scmp.ge.s32.totalorder %s2564_s24, 2 }
 0x7a5   : > { %s1532_s23 = sand.u32 1, %s2565_s30  }
 0x7a6   : > { %p1703_p3 = pnand %p1711_p2, %p2100_p6  ;;  %s1533_s21 = scalar_lea.sflag [#allocation4], %s1532_s23 }
 0x7a8   : > { %p1704_p4 = pneg %p1703_p3 }
 0x7aa   : > { %1929 = dma.done.wait (%p1704_p4), %s1533_s21, 256  }
 0x7ab   : > { %1931 = vsyncadd (%p1704_p4), %s1533_s21, 4294967040  ;;  %s1543_s29 = scalar_lea.sflag [#allocation7], %s1532_s23 }
 0x7ac   : > { %1933 = dma.done.wait (%p1704_p4), %s1543_s29, 1024  }
 0x7ad   : > { %1935 = vsyncadd (%p1704_p4), %s1543_s29, 4294966272  ;;  %s2567_s30 = sld [smem:[#allocation14_spill]]  ;;  %s2570_s27 = smov %s1942_s28 }
 0x7ae   : > { %s2568_s2 = sld [smem:[#allocation12_spill]] }
 0x7af   : > { %s2569_s29 = sld [smem:[#allocation15_spill]] }
 0x7b3   : > { %p33_p5 = scmp.ge.s32.totalorder %s2567_s30, 4  }
 0x7b4   : > { %s2571_s28 = smov %s2568_s2 }
 0x7b5   :  { %35 = sbr.rel (!%p33_p5) target bundleno = 13 (0xd), region = 148 }
 0x7ba   :  { %1549 = vsyncpa [#allocation3], 1 }
 0x7bb   :  { %1551 = vsyncpa [#allocation3 + $0x1], 1 }
 0x7bc   :  { %1552 = vsyncpa [#allocation4], 1 }
 0x7bd   :  { %1554 = vsyncpa [#allocation4 + $0x1], 1 }
 0x7be   :  { %1555 = vsyncpa [#allocation7], 1 }
 0x7bf   :  { %1557 = vsyncpa [#allocation7 + $0x1], 1 }

</bundles_post_ra>
